<compile_context>
chip_gen: v7x
topology: tpu7x:2x2x1
jax: 0.10.0
libtpu: 0.0.40
codegen_flags: <defaults>
</compile_context>

<pallas_src>
import numpy as np
import jax
import jax.numpy as jnp
from jax.experimental import pallas as pl
from jax.experimental.pallas import tpu as pltpu

ALPHA = 0.3
BETA = 0.7
GAMMA = 0.75
SMOOTH = 1.0


def _cdiv(a, b):
    return -(-a // b)


def _round_up(x, m):
    return (x + m - 1) // m * m


def _vmem_limit_bytes():
    # Per-generation scoped-VMEM budget: ~3/4 of physical capacity, capped at 100 MiB
    # (96 MiB on v5e/v6e's 128 MiB VMEM; 48 MiB on v7x's 64 MiB), leaving headroom for
    # Mosaic internal scratch.
    try:
        cap = pltpu.get_tpu_info().vmem_capacity_bytes
    except Exception:
        cap = 128 * 1024 * 1024
    return int(min(100 * 1024 * 1024, (cap // 4) * 3))


def _trainer_kernel(x0_ref, img_ref, nz_ref, coef_ref, temb_ref,
                    wx_ref, wi_ref, wn_ref, ws_ref, part_ref):
    # Per-sample scalars packed into one small block: lane 0 = sqrt(alpha_bar_t),
    # lane 1 = sqrt(1 - alpha_bar_t), lane 2 = valid-row mask (0 for batch padding).
    coef = coef_ref[...]                                  # (TB, 8) f32
    c1 = coef[:, 0:1]
    c2 = coef[:, 1:2]
    mask = coef[:, 2:3]

    x0 = x0_ref[...].astype(jnp.float32)                  # (TB, D) binary target (exact in bf16)
    nz = nz_ref[...]                                      # (TB, D) f32 noise (MSE target)

    # Algorithm 1: x_t = sqrt(alpha_bar_t) * x_0 + sqrt(1 - alpha_bar_t) * noise  (f32 VPU)
    x_t = c1 * x0 + c2 * nz

    # Synthetic time-conditioned model: two K=D GEMMs (no lane-dim concat), bf16 MXU
    # operands, f32 accumulation.
    h = (jnp.dot(x_t.astype(jnp.bfloat16), wx_ref[...],
                 preferred_element_type=jnp.float32)
         + jnp.dot(img_ref[...], wi_ref[...],
                   preferred_element_type=jnp.float32)
         + temb_ref[...])
    h = jnp.maximum(h, 0.0).astype(jnp.bfloat16)          # (TB, Hd)

    noisy_pred = jnp.dot(h, wn_ref[...], preferred_element_type=jnp.float32)   # (TB, D)
    seg_logits = jnp.dot(h, ws_ref[...], preferred_element_type=jnp.float32)   # (TB, D)

    # sigmoid via EUP exp + approximate EUP reciprocal (avoids a (TB, D) VPU divide).
    seg = pl.reciprocal(1.0 + jnp.exp(-seg_logits), approx=True)

    # Reduce along D first, mask the (TB, 1) row sums, derive FP/FN algebraically:
    #   fp = sum((1 - x0) * seg) = sum(seg) - sum(x0 * seg)
    #   fn = sum(x0 * (1 - seg)) = sum(x0) - sum(x0 * seg)
    diff = noisy_pred - nz
    row_sse = jnp.sum(diff * diff, axis=-1, keepdims=True)   # (TB, 1)
    row_tp = jnp.sum(seg * x0, axis=-1, keepdims=True)
    row_seg = jnp.sum(seg, axis=-1, keepdims=True)
    row_x0 = jnp.sum(x0, axis=-1, keepdims=True)

    sse = jnp.sum(mask * row_sse, keepdims=True)             # (1, 1)
    tp = jnp.sum(mask * row_tp, keepdims=True)
    fp = jnp.sum(mask * (row_seg - row_tp), keepdims=True)
    fn = jnp.sum(mask * (row_x0 - row_tp), keepdims=True)

    # Pack the four partials into lanes 0..3 of one lane-dense (1, 128) store.
    lane = jax.lax.broadcasted_iota(jnp.int32, (1, 128), 1)
    part_ref[...] = jnp.where(lane == 0, sse,
                     jnp.where(lane == 1, tp,
                      jnp.where(lane == 2, fp,
                       jnp.where(lane == 3, fn, 0.0))))


def init_params(key, C, H, W, Hd, T, beta_1=1e-4, beta_T=0.02):
    """Diffusion schedule buffers + synthetic model weights (bf16 copies cast once here)."""
    D = C * H * W
    betas = np.linspace(beta_1, beta_T, T, dtype=np.float64)   # register_buffer('betas')
    alphas_bar = np.cumprod(1.0 - betas)
    k1, k2, k3, k4, k5 = jax.random.split(key, 5)
    w_x = jax.random.normal(k1, (D, Hd), jnp.float32) / np.sqrt(D)
    w_img = jax.random.normal(k2, (D, Hd), jnp.float32) / np.sqrt(D)
    w_noise = jax.random.normal(k3, (Hd, D), jnp.float32) / np.sqrt(Hd)
    w_seg = jax.random.normal(k4, (Hd, D), jnp.float32) / np.sqrt(Hd)
    return dict(
        sqrt_alphas_bar=jnp.asarray(np.sqrt(alphas_bar), dtype=jnp.float32),
        sqrt_one_minus_alphas_bar=jnp.asarray(np.sqrt(1.0 - alphas_bar), dtype=jnp.float32),
        # f32 master weights (used by the pure-JAX reference).
        w_x=w_x, w_img=w_img, w_noise=w_noise, w_seg=w_seg,
        t_emb=jax.random.normal(k5, (T, Hd), jnp.float32) * 0.1,
        # bf16 MXU copies cast once (not per forward call).
        w_x_bf16=w_x.astype(jnp.bfloat16),
        w_img_bf16=w_img.astype(jnp.bfloat16),
        w_noise_bf16=w_noise.astype(jnp.bfloat16),
        w_seg_bf16=w_seg.astype(jnp.bfloat16),
    )


def gaussian_diffusion_trainer_forward(x_0, image, params, t, noise):
    """Returns (x_loss, img_loss) like GaussianDiffusionTrainer.forward."""
    B = x_0.shape[0]
    D = int(np.prod(x_0.shape[1:]))
    Hd = params["w_x"].shape[1]

    # Batch tiling: TB a multiple of 16 (bf16 sublane packing); at least 2 grid tiles so
    # the "parallel" axis can use both v7x TensorCores (free on 1-TC v5e/v6e).
    TB = min(128, _round_up(_cdiv(B, 2), 16))
    num_tiles = max(2, _cdiv(B, TB))
    B_pad = num_tiles * TB

    def pad_rows(a):
        if a.shape[0] == B_pad:
            return a
        pad = [(0, B_pad - a.shape[0])] + [(0, 0)] * (a.ndim - 1)
        return jnp.pad(a, pad)

    # bf16 activation streams (x_0 binary -> exact); noise stays f32 (MSE target).
    x0f = pad_rows(x_0.reshape(B, D).astype(jnp.bfloat16))
    imf = pad_rows(image.reshape(B, D).astype(jnp.bfloat16))
    nzf = pad_rows(noise.reshape(B, D).astype(jnp.float32))

    # extract(): per-sample schedule gather + valid-row mask packed into one small block.
    c1 = params["sqrt_alphas_bar"][t].astype(jnp.float32)
    c2 = params["sqrt_one_minus_alphas_bar"][t].astype(jnp.float32)
    coef = jnp.zeros((B_pad, 8), jnp.float32)
    coef = coef.at[:B, 0].set(c1)
    coef = coef.at[:B, 1].set(c2)
    coef = coef.at[:B, 2].set(1.0)                     # mask: 1 = real sample, 0 = padding
    temb = pad_rows(params["t_emb"][t].astype(jnp.float32))

    def const_spec(shape):
        # Grid-invariant weight block: single-buffer (no point double-buffering a block
        # whose index_map never changes); halves resident weight VMEM (key on v7x).
        return pl.BlockSpec(shape, lambda i: (0, 0), pipeline_mode=pl.Buffered(1))

    grid_spec = pltpu.PrefetchScalarGridSpec(
        num_scalar_prefetch=0,
        grid=(num_tiles,),
        in_specs=[
            pl.BlockSpec((TB, D), lambda i: (i, 0)),     # x_0    (bf16)
            pl.BlockSpec((TB, D), lambda i: (i, 0)),     # image  (bf16)
            pl.BlockSpec((TB, D), lambda i: (i, 0)),     # noise  (f32)
            pl.BlockSpec((TB, 8), lambda i: (i, 0)),     # [c1, c2, mask] packed
            pl.BlockSpec((TB, Hd), lambda i: (i, 0)),    # t_emb[t]
            const_spec((D, Hd)),                         # W_x     (bf16)
            const_spec((D, Hd)),                         # W_img   (bf16)
            const_spec((Hd, D)),                         # W_noise (bf16)
            const_spec((Hd, D)),                         # W_seg   (bf16)
        ],
        out_specs=pl.BlockSpec((None, 1, 128), lambda i: (i, 0, 0)),   # packed partials
    )

    part = pl.pallas_call(
        _trainer_kernel,
        out_shape=jax.ShapeDtypeStruct((num_tiles, 1, 128), jnp.float32),
        grid_spec=grid_spec,
        compiler_params=pltpu.CompilerParams(
            dimension_semantics=("parallel",),
            vmem_limit_bytes=_vmem_limit_bytes(),
        ),
    )(x0f, imf, nzf, coef, temb,
      params["w_x_bf16"], params["w_img_bf16"],
      params["w_noise_bf16"], params["w_seg_bf16"])

    # Finalize in the wrapper (keeps the tile axis fully parallel / megacore-safe).
    sse = jnp.sum(part[:, 0, 0])
    tp = jnp.sum(part[:, 0, 1])
    fp = jnp.sum(part[:, 0, 2])
    fn = jnp.sum(part[:, 0, 3])

    x_loss = sse / float(B * D)                                   # F.mse_loss(noisy_pred, noise)
    tversky = (tp + SMOOTH) / (tp + ALPHA * fp + BETA * fn + SMOOTH)
    # Deliberate divergence: clamp 1 - tversky at 0 before the fractional power to guard
    # against NaN from a tiny negative (tversky <= 1 analytically, so this is a no-op).
    img_loss = jnp.maximum(1.0 - tversky, 0.0) ** GAMMA           # FocalTverskyLoss(seg_pred, x_0)
    return x_loss, img_loss


def reference_forward(x_0, image, params, t, noise):
    """Pure-JAX reference mirroring the PyTorch semantics (f32 HIGHEST-precision matmuls)."""
    B = x_0.shape[0]
    D = int(np.prod(x_0.shape[1:]))
    hp = jax.lax.Precision.HIGHEST
    x0 = x_0.reshape(B, D).astype(jnp.float32)
    img = image.reshape(B, D).astype(jnp.float32)
    nz = noise.reshape(B, D).astype(jnp.float32)
    c1 = params["sqrt_alphas_bar"][t].astype(jnp.float32)[:, None]
    c2 = params["sqrt_one_minus_alphas_bar"][t].astype(jnp.float32)[:, None]
    x_t = c1 * x0 + c2 * nz
    h = jnp.maximum(jnp.dot(x_t, params["w_x"], precision=hp)
                    + jnp.dot(img, params["w_img"], precision=hp)
                    + params["t_emb"][t], 0.0)
    noisy_pred = jnp.dot(h, params["w_noise"], precision=hp)
    seg = jax.nn.sigmoid(jnp.dot(h, params["w_seg"], precision=hp))
    x_loss = jnp.mean((noisy_pred - nz) ** 2)
    tp = jnp.sum(seg * x0)
    fp = jnp.sum((1.0 - x0) * seg)
    fn = jnp.sum(x0 * (1.0 - seg))
    tversky = (tp + SMOOTH) / (tp + ALPHA * fp + BETA * fn + SMOOTH)
    img_loss = (1.0 - tversky) ** GAMMA
    return x_loss, img_loss


if __name__ == "__main__":
    B, C, H, W = 2, 4, 16, 16
    Hd, T = 128, 8    # Hd=256 would fill the 256-wide MXU on v6e/v7x; kept small for the demo.

    key = jax.random.PRNGKey(0)
    kp, kx, ki, kt, kn = jax.random.split(key, 5)

    params = init_params(kp, C, H, W, Hd, T)

    # x_0: binary segmentation ground truth; image: conditioning image.
    x_0 = (jax.random.uniform(kx, (B, C, H, W)) > 0.5).astype(jnp.float32)
    image = jax.random.normal(ki, (B, C, H, W), jnp.float32)

    # torch.randint(T, (B,)) and torch.randn_like(x_0) -> host-side JAX RNG.
    t = jax.random.randint(kt, (B,), 0, T)
    noise = jax.random.normal(kn, (B, C, H, W), jnp.float32)

    x_loss, img_loss = gaussian_diffusion_trainer_forward(x_0, image, params, t, noise)
    (x_loss, img_loss) = jax.block_until_ready((x_loss, img_loss))

    x_ref, i_ref = reference_forward(x_0, image, params, t, noise)
    # bf16 MXU operands / bf16 input streams vs f32 HIGHEST reference -> loosened tolerance.
    np.testing.assert_allclose(float(x_loss), float(x_ref), rtol=2e-2, atol=2e-3)
    np.testing.assert_allclose(float(img_loss), float(i_ref), rtol=2e-2, atol=2e-3)

    print("KERNEL_OK")
</pallas_src>

<mosaic_0001>
module attributes {stable_mosaic.version = 11 : i64} {
  func.func @_trainer_kernel(%arg0: i32, %arg1: memref<16x1024xbf16, #tpu.memory_space<vmem>>, %arg2: memref<16x1024xbf16, #tpu.memory_space<vmem>>, %arg3: memref<16x1024xf32, #tpu.memory_space<vmem>>, %arg4: memref<16x8xf32, #tpu.memory_space<vmem>>, %arg5: memref<16x128xf32, #tpu.memory_space<vmem>>, %arg6: memref<1024x128xbf16, #tpu.memory_space<vmem>>, %arg7: memref<1024x128xbf16, #tpu.memory_space<vmem>>, %arg8: memref<128x1024xbf16, #tpu.memory_space<vmem>>, %arg9: memref<128x1024xbf16, #tpu.memory_space<vmem>>, %arg10: memref<1x1x128xf32, #tpu.memory_space<vmem>>) attributes {dimension_semantics = [#tpu.dimension_semantics<parallel>], iteration_bounds = array<i64: 2>, scalar_prefetch = 0 : i64, scratch_operands = 0 : i64, tpu.core_type = #tpu.core_type<tc>, window_params = [{transform_indices = @transform_0, window_bounds = array<i64: 16, 1024>}, {transform_indices = @transform_1, window_bounds = array<i64: 16, 1024>}, {transform_indices = @transform_2, window_bounds = array<i64: 16, 1024>}, {transform_indices = @transform_3, window_bounds = array<i64: 16, 8>}, {transform_indices = @transform_4, window_bounds = array<i64: 16, 128>}, {pipeline_mode = #tpu.pipeline_mode<synchronous>, transform_indices = @transform_5, window_bounds = array<i64: 1024, 128>}, {pipeline_mode = #tpu.pipeline_mode<synchronous>, transform_indices = @transform_6, window_bounds = array<i64: 1024, 128>}, {pipeline_mode = #tpu.pipeline_mode<synchronous>, transform_indices = @transform_7, window_bounds = array<i64: 128, 1024>}, {pipeline_mode = #tpu.pipeline_mode<synchronous>, transform_indices = @transform_8, window_bounds = array<i64: 128, 1024>}, {transform_indices = @transform_9, window_bounds = array<i64: 1, 1, 128>}]} {
    %c0 = arith.constant 0 : index
    %c0_0 = arith.constant 0 : index
    %0 = vector.load %arg4[%c0, %c0_0] : memref<16x8xf32, #tpu.memory_space<vmem>>, vector<16x8xf32>
    %1 = vector.extract_strided_slice %0 {offsets = [0, 0], sizes = [16, 1], strides = [1, 1]} : vector<16x8xf32> to vector<16x1xf32>
    %2 = vector.extract_strided_slice %0 {offsets = [0, 1], sizes = [16, 1], strides = [1, 1]} : vector<16x8xf32> to vector<16x1xf32>
    %3 = vector.extract_strided_slice %0 {offsets = [0, 2], sizes = [16, 1], strides = [1, 1]} : vector<16x8xf32> to vector<16x1xf32>
    %c0_1 = arith.constant 0 : index
    %c0_2 = arith.constant 0 : index
    %4 = vector.load %arg1[%c0_1, %c0_2] : memref<16x1024xbf16, #tpu.memory_space<vmem>>, vector<16x1024xbf16>
    %5 = arith.extf %4 : vector<16x1024xbf16> to vector<16x1024xf32>
    %c0_3 = arith.constant 0 : index
    %c0_4 = arith.constant 0 : index
    %6 = vector.load %arg3[%c0_3, %c0_4] : memref<16x1024xf32, #tpu.memory_space<vmem>>, vector<16x1024xf32>
    %7 = vector.broadcast %1 : vector<16x1xf32> to vector<16x1024xf32>
    %8 = arith.mulf %7, %5 : vector<16x1024xf32>
    %9 = vector.broadcast %2 : vector<16x1xf32> to vector<16x1024xf32>
    %10 = arith.mulf %9, %6 : vector<16x1024xf32>
    %11 = arith.addf %8, %10 : vector<16x1024xf32>
    %12 = arith.truncf %11 : vector<16x1024xf32> to vector<16x1024xbf16>
    %c0_5 = arith.constant 0 : index
    %c0_6 = arith.constant 0 : index
    %13 = vector.load %arg6[%c0_5, %c0_6] : memref<1024x128xbf16, #tpu.memory_space<vmem>>, vector<1024x128xbf16>
    %cst = arith.constant dense<0.000000e+00> : vector<16x128xf32>
    %14 = tpu.matmul %12, %13, %cst {dimension_numbers = #tpu.dot_dimension_numbers<[1], [0], [0], [1], [0, 0, 1, 1], [], []>} : vector<16x1024xbf16>, vector<1024x128xbf16>, vector<16x128xf32> -> vector<16x128xf32>
    %c0_7 = arith.constant 0 : index
    %c0_8 = arith.constant 0 : index
    %15 = vector.load %arg2[%c0_7, %c0_8] : memref<16x1024xbf16, #tpu.memory_space<vmem>>, vector<16x1024xbf16>
    %c0_9 = arith.constant 0 : index
    %c0_10 = arith.constant 0 : index
    %16 = vector.load %arg7[%c0_9, %c0_10] : memref<1024x128xbf16, #tpu.memory_space<vmem>>, vector<1024x128xbf16>
    %cst_11 = arith.constant dense<0.000000e+00> : vector<16x128xf32>
    %17 = tpu.matmul %15, %16, %cst_11 {dimension_numbers = #tpu.dot_dimension_numbers<[1], [0], [0], [1], [0, 0, 1, 1], [], []>} : vector<16x1024xbf16>, vector<1024x128xbf16>, vector<16x128xf32> -> vector<16x128xf32>
    %18 = arith.addf %14, %17 : vector<16x128xf32>
    %c0_12 = arith.constant 0 : index
    %c0_13 = arith.constant 0 : index
    %19 = vector.load %arg5[%c0_12, %c0_13] : memref<16x128xf32, #tpu.memory_space<vmem>>, vector<16x128xf32>
    %20 = arith.addf %18, %19 : vector<16x128xf32>
    %cst_14 = arith.constant 0.000000e+00 : f32
    %21 = vector.broadcast %cst_14 : f32 to vector<16x128xf32>
    %22 = arith.maximumf %20, %21 : vector<16x128xf32>
    %23 = arith.truncf %22 : vector<16x128xf32> to vector<16x128xbf16>
    %c0_15 = arith.constant 0 : index
    %c0_16 = arith.constant 0 : index
    %24 = vector.load %arg8[%c0_15, %c0_16] : memref<128x1024xbf16, #tpu.memory_space<vmem>>, vector<128x1024xbf16>
    %cst_17 = arith.constant dense<0.000000e+00> : vector<16x1024xf32>
    %25 = tpu.matmul %23, %24, %cst_17 {dimension_numbers = #tpu.dot_dimension_numbers<[1], [0], [0], [1], [0, 0, 1, 1], [], []>} : vector<16x128xbf16>, vector<128x1024xbf16>, vector<16x1024xf32> -> vector<16x1024xf32>
    %c0_18 = arith.constant 0 : index
    %c0_19 = arith.constant 0 : index
    %26 = vector.load %arg9[%c0_18, %c0_19] : memref<128x1024xbf16, #tpu.memory_space<vmem>>, vector<128x1024xbf16>
    %cst_20 = arith.constant dense<0.000000e+00> : vector<16x1024xf32>
    %27 = tpu.matmul %23, %26, %cst_20 {dimension_numbers = #tpu.dot_dimension_numbers<[1], [0], [0], [1], [0, 0, 1, 1], [], []>} : vector<16x128xbf16>, vector<128x1024xbf16>, vector<16x1024xf32> -> vector<16x1024xf32>
    %cst_21 = arith.constant 0.000000e+00 : f32
    %28 = vector.broadcast %cst_21 : f32 to vector<16x1024xf32>
    %29 = arith.subf %28, %27 : vector<16x1024xf32>
    %30 = math.exp %29 : vector<16x1024xf32>
    %cst_22 = arith.constant 1.000000e+00 : f32
    %31 = vector.broadcast %cst_22 : f32 to vector<16x1024xf32>
    %32 = arith.addf %31, %30 : vector<16x1024xf32>
    %33 = tpu.reciprocal %32 {approx = true} : vector<16x1024xf32> -> vector<16x1024xf32>
    %34 = arith.subf %25, %6 : vector<16x1024xf32>
    %35 = arith.mulf %34, %34 : vector<16x1024xf32>
    %cst_23 = arith.constant dense<0.000000e+00> : vector<16xf32>
    %36 = vector.multi_reduction <add>, %35, %cst_23 [1] : vector<16x1024xf32> to vector<16xf32>
    %37 = vector.shape_cast %36 : vector<16xf32> to vector<16x1xf32>
    %38 = arith.mulf %33, %5 : vector<16x1024xf32>
    %cst_24 = arith.constant dense<0.000000e+00> : vector<16xf32>
    %39 = vector.multi_reduction <add>, %38, %cst_24 [1] : vector<16x1024xf32> to vector<16xf32>
    %40 = vector.shape_cast %39 : vector<16xf32> to vector<16x1xf32>
    %cst_25 = arith.constant dense<0.000000e+00> : vector<16xf32>
    %41 = vector.multi_reduction <add>, %33, %cst_25 [1] : vector<16x1024xf32> to vector<16xf32>
    %42 = vector.shape_cast %41 : vector<16xf32> to vector<16x1xf32>
    %cst_26 = arith.constant dense<0.000000e+00> : vector<16xf32>
    %43 = vector.multi_reduction <add>, %5, %cst_26 [1] : vector<16x1024xf32> to vector<16xf32>
    %44 = vector.shape_cast %43 : vector<16xf32> to vector<16x1xf32>
    %45 = arith.mulf %3, %37 : vector<16x1xf32>
    %46 = vector.shape_cast %45 : vector<16x1xf32> to vector<1x16x1xf32>
    %cst_27 = arith.constant dense<0.000000e+00> : vector<1xf32>
    %47 = vector.multi_reduction <add>, %46, %cst_27 [1, 2] : vector<1x16x1xf32> to vector<1xf32>
    %48 = vector.shape_cast %47 : vector<1xf32> to vector<1x1x1xf32>
    %49 = vector.extract %48[0, 0, 0] : f32 from vector<1x1x1xf32>
    %50 = vector.broadcast %49 : f32 to vector<1x1xf32>
    %51 = arith.mulf %3, %40 : vector<16x1xf32>
    %52 = vector.shape_cast %51 : vector<16x1xf32> to vector<1x16x1xf32>
    %cst_28 = arith.constant dense<0.000000e+00> : vector<1xf32>
    %53 = vector.multi_reduction <add>, %52, %cst_28 [1, 2] : vector<1x16x1xf32> to vector<1xf32>
    %54 = vector.shape_cast %53 : vector<1xf32> to vector<1x1x1xf32>
    %55 = vector.extract %54[0, 0, 0] : f32 from vector<1x1x1xf32>
    %56 = vector.broadcast %55 : f32 to vector<1x1xf32>
    %57 = arith.subf %42, %40 : vector<16x1xf32>
    %58 = arith.mulf %3, %57 : vector<16x1xf32>
    %59 = vector.shape_cast %58 : vector<16x1xf32> to vector<1x16x1xf32>
    %cst_29 = arith.constant dense<0.000000e+00> : vector<1xf32>
    %60 = vector.multi_reduction <add>, %59, %cst_29 [1, 2] : vector<1x16x1xf32> to vector<1xf32>
    %61 = vector.shape_cast %60 : vector<1xf32> to vector<1x1x1xf32>
    %62 = vector.extract %61[0, 0, 0] : f32 from vector<1x1x1xf32>
    %63 = vector.broadcast %62 : f32 to vector<1x1xf32>
    %64 = arith.subf %44, %40 : vector<16x1xf32>
    %65 = arith.mulf %3, %64 : vector<16x1xf32>
    %66 = vector.shape_cast %65 : vector<16x1xf32> to vector<1x16x1xf32>
    %cst_30 = arith.constant dense<0.000000e+00> : vector<1xf32>
    %67 = vector.multi_reduction <add>, %66, %cst_30 [1, 2] : vector<1x16x1xf32> to vector<1xf32>
    %68 = vector.shape_cast %67 : vector<1xf32> to vector<1x1x1xf32>
    %69 = vector.extract %68[0, 0, 0] : f32 from vector<1x1x1xf32>
    %70 = vector.broadcast %69 : f32 to vector<1x1xf32>
    %71 = tpu.iota {dimensions = array<i32: 1>} : vector<1x128xi32>
    %c0_i32 = arith.constant 0 : i32
    %72 = vector.broadcast %c0_i32 : i32 to vector<1x128xi32>
    %73 = arith.cmpi eq, %71, %72 : vector<1x128xi32>
    %c1_i32 = arith.constant 1 : i32
    %74 = vector.broadcast %c1_i32 : i32 to vector<1x128xi32>
    %75 = arith.cmpi eq, %71, %74 : vector<1x128xi32>
    %c2_i32 = arith.constant 2 : i32
    %76 = vector.broadcast %c2_i32 : i32 to vector<1x128xi32>
    %77 = arith.cmpi eq, %71, %76 : vector<1x128xi32>
    %c3_i32 = arith.constant 3 : i32
    %78 = vector.broadcast %c3_i32 : i32 to vector<1x128xi32>
    %79 = arith.cmpi eq, %71, %78 : vector<1x128xi32>
    %cst_31 = arith.constant 0.000000e+00 : f32
    %80 = vector.shape_cast %70 : vector<1x1xf32> to vector<1x1xf32>
    %81 = vector.broadcast %80 : vector<1x1xf32> to vector<1x128xf32>
    %82 = vector.broadcast %cst_31 : f32 to vector<1x128xf32>
    %83 = arith.select %79, %81, %82 : vector<1x128xi1>, vector<1x128xf32>
    %84 = vector.shape_cast %63 : vector<1x1xf32> to vector<1x1xf32>
    %85 = vector.broadcast %84 : vector<1x1xf32> to vector<1x128xf32>
    %86 = arith.select %77, %85, %83 : vector<1x128xi1>, vector<1x128xf32>
    %87 = vector.shape_cast %56 : vector<1x1xf32> to vector<1x1xf32>
    %88 = vector.broadcast %87 : vector<1x1xf32> to vector<1x128xf32>
    %89 = arith.select %75, %88, %86 : vector<1x128xi1>, vector<1x128xf32>
    %90 = vector.shape_cast %50 : vector<1x1xf32> to vector<1x1xf32>
    %91 = vector.broadcast %90 : vector<1x1xf32> to vector<1x128xf32>
    %92 = arith.select %73, %91, %89 : vector<1x128xi1>, vector<1x128xf32>
    %c0_32 = arith.constant 0 : index
    %c0_33 = arith.constant 0 : index
    %c0_34 = arith.constant 0 : index
    %93 = vector.load %arg10[%c0_32, %c0_33, %c0_34] : memref<1x1x128xf32, #tpu.memory_space<vmem>>, vector<1x1x128xf32>
    %94 = vector.shape_cast %93 : vector<1x1x128xf32> to vector<1x128xf32>
    %95 = vector.shape_cast %92 : vector<1x128xf32> to vector<1x1x128xf32>
    tpu.vector_store %arg10[%c0_32, %c0_33, %c0_34], %95 {strides = array<i32>} : memref<1x1x128xf32, #tpu.memory_space<vmem>>, vector<1x1x128xf32>,
    return
  }
  func.func @transform_0(%arg0: i32) -> (i32, i32) {
    %c0_i32 = arith.constant 0 : i32
    %c0_i32_0 = arith.constant 0 : i32
    return %arg0, %c0_i32 : i32, i32
  }
  func.func @transform_1(%arg0: i32) -> (i32, i32) {
    %c0_i32 = arith.constant 0 : i32
    %c0_i32_0 = arith.constant 0 : i32
    return %arg0, %c0_i32 : i32, i32
  }
  func.func @transform_2(%arg0: i32) -> (i32, i32) {
    %c0_i32 = arith.constant 0 : i32
    %c0_i32_0 = arith.constant 0 : i32
    return %arg0, %c0_i32 : i32, i32
  }
  func.func @transform_3(%arg0: i32) -> (i32, i32) {
    %c0_i32 = arith.constant 0 : i32
    %c0_i32_0 = arith.constant 0 : i32
    return %arg0, %c0_i32 : i32, i32
  }
  func.func @transform_4(%arg0: i32) -> (i32, i32) {
    %c0_i32 = arith.constant 0 : i32
    %c0_i32_0 = arith.constant 0 : i32
    return %arg0, %c0_i32 : i32, i32
  }
  func.func @transform_5(%arg0: i32) -> (i32, i32) {
    %c0_i32 = arith.constant 0 : i32
    %c0_i32_0 = arith.constant 0 : i32
    %c0_i32_1 = arith.constant 0 : i32
    return %c0_i32, %c0_i32_0 : i32, i32
  }
  func.func @transform_6(%arg0: i32) -> (i32, i32) {
    %c0_i32 = arith.constant 0 : i32
    %c0_i32_0 = arith.constant 0 : i32
    %c0_i32_1 = arith.constant 0 : i32
    return %c0_i32, %c0_i32_0 : i32, i32
  }
  func.func @transform_7(%arg0: i32) -> (i32, i32) {
    %c0_i32 = arith.constant 0 : i32
    %c0_i32_0 = arith.constant 0 : i32
    %c0_i32_1 = arith.constant 0 : i32
    return %c0_i32, %c0_i32_0 : i32, i32
  }
  func.func @transform_8(%arg0: i32) -> (i32, i32) {
    %c0_i32 = arith.constant 0 : i32
    %c0_i32_0 = arith.constant 0 : i32
    %c0_i32_1 = arith.constant 0 : i32
    return %c0_i32, %c0_i32_0 : i32, i32
  }
  func.func @transform_9(%arg0: i32) -> (i32, i32, i32) {
    %c0_i32 = arith.constant 0 : i32
    %c0_i32_0 = arith.constant 0 : i32
    %c0_i32_1 = arith.constant 0 : i32
    return %arg0, %c0_i32, %c0_i32_0 : i32, i32, i32
  }
}

</mosaic_0001>

<bundles_post_ra>
// kernel: tpu_custom_call.1
= control target key start
LH: loop header
LB: loop body
LE: loop exit
PB: predicated region body
PF: predicated region fallthrough
CT: control target
= control target key end

     0   :  { %s5673_s0 = inlined_call_operand.hbm [shape: bf16[32,1024], index: 0, kind: input, shape index: {}]   ;;  %s5674_s1 = inlined_call_operand.hbm [shape: bf16[32,1024], index: 1, kind: input, shape index: {}]   ;;  %s5675_s2 = inlined_call_operand.hbm [shape: f32[32,1024], index: 2, kind: input, shape index: {}]   ;;  %s5676_s3 = inlined_call_operand.hbm [shape: f32[32,8], index: 3, kind: input, shape index: {}]   ;;  %s5677_s4 = inlined_call_operand.hbm [shape: f32[32,128], index: 4, kind: input, shape index: {}]   ;;  %s5678_s5 = inlined_call_operand.hbm [shape: bf16[1024,128], index: 5, kind: input, shape index: {}]   ;;  %s5679_s6 = inlined_call_operand.hbm [shape: bf16[1024,128], index: 6, kind: input, shape index: {}]   ;;  %s5680_s7 = inlined_call_operand.hbm [shape: bf16[128,1024], index: 7, kind: input, shape index: {}]   ;;  %s5681_s8 = inlined_call_operand.hbm [shape: bf16[128,1024], index: 8, kind: input, shape index: {}]   ;;  %s5682_s9 = inlined_call_operand.hbm [shape: f32[2,1,128], index: 9, kind: output, shape index: {}]  }
   0x1   :  { %5722 = sst [smem:[#allocation35_spill]] %s5674_s1 }
   0x2   :  { %5723 = sst [smem:[#allocation36_spill]] %s5676_s3 }
   0x3   :  { %5724 = sst [smem:[#allocation37_spill]] %s5678_s5 }
   0x4   :  { %5725 = sst [smem:[#allocation38_spill]] %s5680_s7 }
   0x5   :  { %5726 = sst [smem:[#allocation39_spill]] %s5682_s9 }
   0x6   :  { %14 = vsyncpa [#allocation3], 0 }
   0x7   :  { %16 = vsyncpa [#allocation3 + $0x1], 0 }
   0x8   :  { %17 = vsyncpa [#allocation6], 0 }
   0x9   :  { %19 = vsyncpa [#allocation6 + $0x1], 0 }
   0xa   :  { %20 = vsyncpa [#allocation9], 0 }
   0xb   :  { %22 = vsyncpa [#allocation9 + $0x1], 0 }
   0xc   :  { %23 = vsyncpa [#allocation12], 0 }
   0xd   :  { %24 = vsyncpa [#allocation15], 0 }
   0xe   :  { %25 = vsyncpa [#allocation4], 0 }
   0xf   :  { %27 = vsyncpa [#allocation4 + $0x1], 0  ;;  %s4957_s30 = smov 0   ;;  %s4959_s10 = smov 0  }
  0x10   :  { %s4961_s11 = smov 0   ;;  %s4963_s12 = smov 0  }
  0x11 LB: > { %5727 = sst [smem:[#allocation24_spill]] %s4873_s30  ;;  %s4978_s13 = sadd.s32 4294967295, %s4885_s12   ;;  %s4885_s12 = sphi %s4963_s12, %s5784_s12   ;;  %s4881_s11 = sphi %s4961_s11, %s5787_s11   ;;  %s4877_s10 = sphi %s4959_s10, %s5786_s10   ;;  %s4873_s30 = sphi %s4957_s30, %s5785_s30  }
  0x12   : > { %5728 = sst [smem:[#allocation25_spill]] %s4877_s10  ;;  %s3717_s14 = sadd.s32 4294967294, %s4885_s12  }
  0x13   : > { %5729 = sst [smem:[#allocation26_spill]] %s4881_s11  ;;  %p53_p0 = scmp.ne.s32.totalorder %s4877_s10, %s4873_s30 }
  0x14   : > { %5730 = sst [smem:[#allocation27_spill]] %s4978_s13  ;;  %p5683_p1 = scmp.eq.s32.totalorder %s4978_s13, 0 }
  0x15   : > { %p271_p3 = scmp.eq.s32.totalorder %s3717_s14, 1  ;;  %p3718_p5 = scmp.ge.s32.totalorder %s4885_s12, 1 }
  0x16   : > { %p4987_p4 = por %p5683_p1, %p53_p0  ;;  %p278_p7 = scmp.lt.s32.totalorder %s4885_s12, 3 }
  0x17   : > { %p4992_p6 = por %p271_p3, %p53_p0  ;;  %s4887_s18 = smov [#allocation11]  }
  0x18   : > { %s5731_s15 = scalar_select %p4987_p4, 1, 0 }
  0x19   : > { %s5733_s16 = scalar_select %p4992_p6, 1, 0 }
  0x1a   : > { %5732 = sst [smem:[#allocation28_spill]] %s5731_s15  ;;  %p4997_p8 = pnand %p3718_p5, %p278_p7 }
  0x1b   : > { %5734 = sst [smem:[#allocation29_spill]] %s5733_s16  ;;  %s290_s19 = sshll.u32 %s4887_s18, 4  ;;  %s5001_s19 = int_to_ptr.vmem [resolvable:$true] %s290_s19 }
  0x1c   : > { %s5735_s17 = scalar_select %p4997_p8, 1, 0 }
  0x1d   : > { %p4239_p9 = pneg %p4997_p8  ;;  %s4888_s21 = smov [#allocation14]  }
  0x1e   : > { %5736 = sst [smem:[#allocation30_spill]] %s5735_s17  ;;  %s316_s22 = sshll.u32 %s4888_s21, 4  ;;  %s5012_s22 = int_to_ptr.vmem [resolvable:$true] %s316_s22 }
  0x1f   : > { %p5008_p11 = pnand %p4239_p9, %p5683_p1  ;;  %s5738_s5 = sld [smem:[#allocation37_spill]] }
  0x21   : > { %s5737_s20 = scalar_select %p5008_p11, 1, 0 }
  0x22   : > { %p5022_p13 = pneg %p5008_p11 }
  0x24   : > { %s5739_s28 = scalar_select %p5022_p13, 1, 0 }
  0x25   : > { %s4541_s25 = scalar_lea.hbm %s5738_s5, 8192 }
  0x26   : > { %p4542_p12 = scmp.ne.s32.totalorder %s5738_s5, %s4541_s25  ;;  %p4548_p5 = scmp.lt.u32.totalorder %s4541_s25, %s5738_s5 }
  0x28   : > { %p4544_p0 = pnand %p5022_p13, %p4542_p12 }
  0x2a   : > { %p4545_p3 = pneg %p4544_p0 }
  0x2c   : > { %p4550_p7 = pnand %p4548_p5, %p4545_p3 }
  0x2e   : > { %4553 = shalt.err (!%p4550_p7)
}
  0x2f   : > { %s4554_s18 = scalar_lea.vmem %s5001_s19, 8192  ;;  %p4562_p2 = scmp.lt.s32.totalorder %s5001_s19, %s5001_s19 }
  0x30   : > { %p4555_p9 = scmp.ne.s32.totalorder %s5001_s19, %s4554_s18  ;;  %p4563_p6 = scmp.lt.s32.totalorder %s4554_s18, %s4554_s18 }
  0x32   : > { %p4557_p10 = pnand %p4555_p9, %p5022_p13  ;;  %p4564_p12 = por %p4563_p6, %p4562_p2 }
  0x34   : > { %p4558_p1 = pneg %p4557_p10 }
  0x36   : > { %p4565_p0 = pnand %p4564_p12, %p4558_p1 }
  0x38   : > { %4568 = shalt.err (!%p4565_p0)
}
  0x39   : > { %s5686_s21 = smov 64   ;;  %s5688_s23 = smov 4  }
  0x3a   : > { %4242 = dma.hbm_to_vmem [thread:$0]  (!%p5008_p11), %s5738_s5, 8192, %s5001_s19, [#allocation12], %s5686_s21, %s5686_s21, %s5688_s23  }
  0x3b   : > { %s5740_s7 = sld [smem:[#allocation38_spill]] }
  0x41   : > { %s4569_s29 = scalar_lea.hbm %s5740_s7, 8192 }
  0x42   : > { %p4570_p1 = scmp.ne.s32.totalorder %s5740_s7, %s4569_s29  ;;  %p4576_p10 = scmp.lt.u32.totalorder %s4569_s29, %s5740_s7 }
  0x44   : > { %p4572_p2 = pnand %p4570_p1, %p5022_p13 }
  0x46   : > { %p4573_p6 = pneg %p4572_p2 }
  0x48   : > { %p4578_p3 = pnand %p4576_p10, %p4573_p6 }
  0x4a   : > { %4581 = shalt.err (!%p4578_p3)
}
  0x4b   : > { %s4582_s19 = scalar_lea.vmem %s5012_s22, 8192  ;;  %p4590_p12 = scmp.lt.s32.totalorder %s5012_s22, %s5012_s22 }
  0x4c   : > { %p4583_p5 = scmp.ne.s32.totalorder %s5012_s22, %s4582_s19  ;;  %p4591_p0 = scmp.lt.s32.totalorder %s4582_s19, %s4582_s19 }
  0x4e   : > { %p4585_p7 = pnand %p4583_p5, %p5022_p13  ;;  %p4592_p1 = por %p4591_p0, %p4590_p12 }
  0x50   : > { %p4586_p9 = pneg %p4585_p7 }
  0x52   : > { %p4593_p2 = pnand %p4592_p1, %p4586_p9 }
  0x54   : > { %4596 = shalt.err (!%p4593_p2)
}
  0x55   : > { %s5689_s24 = smov 512   ;;  %s5691_s30 = smov 32  }
  0x56   : > { %4248 = dma.hbm_to_vmem [thread:$0]  (!%p5008_p11), %s5740_s7, 8192, %s5012_s22, [#allocation15], %s5689_s24, %s5689_s24, %s5691_s30  }
  0x57   : > { %s5073_s26 = sadd.s32 1, %s4885_s12   ;;  %s40_s29 = sadd.s32 1, %s4881_s11 }
  0x58   : > { %5741 = sst [smem:[#allocation31_spill]] %s5073_s26  ;;  %s37_s27 = ssub.s32 %s4885_s12, %s5073_s26 }
  0x59   : > { %p38_p6 = scmp.eq.s32.totalorder %s37_s27, 0  ;;  %p47_p10 = scmp.ne.s32.totalorder %s4881_s11, %s4877_s10 }
  0x5a   : > { %p48_p3 = scmp.eq.s32.totalorder %s4885_s12, 0  ;;  %p5743_p7 = scmp.eq.s32.totalorder %s4978_s13, 1 }
  0x5b   : > { %s5082_s14 = scalar_select %p38_p6, %s4881_s11, %s40_s29  }
  0x5c   : > { %p49_p5 = por %p48_p3, %p47_p10  ;;  %p5086_p9 = por %p5743_p7, %p47_p10 }
  0x5d   : > { %5742 = sst [smem:[#allocation32_spill]] %s5082_s14  ;;  %p4276_p12 = scmp.lt.s32.totalorder %s4885_s12, 2 }
  0x5e   : > { %s5744_s18 = scalar_select %p5086_p9, 1, 0 }
  0x5f   : > { %s5092_s22 = sand.u32 1, %s4881_s11   ;;  %s5694_s16 = sshll.u32 %s4885_s12, 10 }
  0x60   : > { %5745 = sst [smem:[#allocation33_spill]] %s5744_s18  ;;  %s5693_s19 = sshll.u32 %s5092_s22, 6 }
  0x61   : > { %p5096_p0 = pnand %p4276_p12, %p49_p5  ;;  %s5697_s27 = sand.u32 1, %s4885_s12  }
  0x62   : > { %s5747_s1 = sld [smem:[#allocation35_spill]]  ;;  %s369_s24 = scalar_lea.vmem [#allocation5], %s5693_s19 }
  0x63   : > { %s5746_s25 = scalar_select %p5096_p0, 1, 0 }
  0x64   : > { %s377_s30 = sshll.u32 %s369_s24, 4  ;;  %s5115_s7 = scalar_lea.sflag [#allocation6], %s5697_s27  ;;  %s5110_s30 = int_to_ptr.vmem [resolvable:$true] %s377_s30 }
  0x65   : > { %5748 = sst [smem:[#allocation34_spill]] %s5115_s7  ;;  %p5121_p2 = pneg %p5096_p0 }
  0x67   : > { %s5749_s21 = scalar_select %p5121_p2, 1, 0 }
  0x68   : > { %s5106_s23 = scalar_lea.hbm %s5747_s1, %s5694_s16  ;;  %s4602_s24 = scalar_lea.hbm %s5747_s1, 2048 }
  0x69   : > { %s4597_s14 = scalar_lea.hbm %s5106_s23, 1024  ;;  %p4603_p3 = scmp.lt.u32.totalorder %s5106_s23, %s5747_s1 }
  0x6a   : > { %p4598_p1 = scmp.ne.s32.totalorder %s5106_s23, %s4597_s14  ;;  %p4604_p5 = scmp.lt.u32.totalorder %s4602_s24, %s4597_s14 }
  0x6b   : > { %p4606_p12 = scmp.lt.u32.totalorder %s4597_s14, %s5106_s23 }
  0x6c   : > { %p4600_p6 = pnand %p5121_p2, %p4598_p1  ;;  %p4605_p7 = por %p4604_p5, %p4603_p3 }
  0x6e   : > { %p4601_p10 = pneg %p4600_p6  ;;  %p4607_p9 = por %p4606_p12, %p4605_p7 }
  0x70   : > { %p4608_p4 = pnand %p4607_p9, %p4601_p10 }
  0x72   : > { %4611 = shalt.err (!%p4608_p4)
}
  0x73   : > { %s4612_s27 = scalar_lea.vmem %s5110_s30, 1024  ;;  %s4893_s19 = smov [#allocation5]  }
  0x74   : > { %p4613_p1 = scmp.ne.s32.totalorder %s5110_s30, %s4612_s27  ;;  %s4617_s29 = sshll.u32 %s4893_s19, 4  ;;  %s4618_s29 = int_to_ptr.vmem [resolvable:$false] %s4617_s29 }
  0x75   : > { %s4619_s5 = scalar_lea.vmem %s4618_s29, 2048  ;;  %p4620_p11 = scmp.lt.s32.totalorder %s5110_s30, %s4618_s29 }
  0x76   : > { %p4615_p6 = pnand %p4613_p1, %p5121_p2  ;;  %p4621_p13 = scmp.lt.s32.totalorder %s4619_s5, %s4612_s27 }
  0x78   : > { %p4616_p8 = pneg %p4615_p6  ;;  %p4622_p3 = por %p4621_p13, %p4620_p11 }
  0x7a   : > { %p4623_p5 = pnand %p4622_p3, %p4616_p8 }
  0x7c   : > { %4626 = shalt.err (!%p4623_p5)
}
  0x7d   : > { %s5750_s14 = smov 32   ;;  %s5751_s16 = smov 512  }
  0x7e   : > { %4258 = dma.hbm_to_vmem [thread:$0]  (!%p5096_p0), %s5106_s23, 1024, %s5110_s30, %s5115_s7, %s5751_s16, %s5751_s16, %s5750_s14  }
  0x7f   : > { %s5707_s24 = sshll.u32 %s4885_s12, 8  ;;  %s5752_s3 = sld [smem:[#allocation36_spill]] }
  0x80   : > { %s5753_s5 = sshll.u32 %s5092_s22, 4  ;;  %s5754_s26 = sand.u32 1, %s4885_s12  }
  0x81   : > { %s413_s1 = scalar_lea.vmem [#allocation8], %s5753_s5  ;;  %s5162_s9 = scalar_lea.sflag [#allocation9], %s5754_s26 }
  0x82   : > { %s420_s11 = sshll.u32 %s413_s1, 4  ;;  %s5158_s11 = int_to_ptr.vmem [resolvable:$true] %s420_s11 }
  0x85   : > { %s5154_s29 = scalar_lea.hbm %s5752_s3, %s5707_s24  ;;  %s4632_s19 = scalar_lea.hbm %s5752_s3, 512 }
  0x86   : > { %s4627_s23 = scalar_lea.hbm %s5154_s29, 256  ;;  %p4633_p13 = scmp.lt.u32.totalorder %s5154_s29, %s5752_s3 }
  0x87   : > { %p4628_p4 = scmp.ne.s32.totalorder %s5154_s29, %s4627_s23  ;;  %p4634_p9 = scmp.lt.u32.totalorder %s4632_s19, %s4627_s23 }
  0x88   : > { %p4636_p7 = scmp.lt.u32.totalorder %s4627_s23, %s5154_s29 }
  0x89   : > { %p4630_p8 = pnand %p4628_p4, %p5121_p2  ;;  %p4635_p10 = por %p4634_p9, %p4633_p13 }
  0x8b   : > { %p4631_p11 = pneg %p4630_p8  ;;  %p4637_p12 = por %p4636_p7, %p4635_p10 }
  0x8d   : > { %p4638_p1 = pnand %p4637_p12, %p4631_p11 }
  0x8f   : > { %4641 = shalt.err (!%p4638_p1)
}
  0x90   : > { %s4642_s1 = scalar_lea.vmem %s5158_s11, 256  ;;  %s4894_s26 = smov [#allocation8]  }
  0x91   : > { %p4643_p6 = scmp.ne.s32.totalorder %s5158_s11, %s4642_s1  ;;  %s4647_s5 = sshll.u32 %s4894_s26, 4  ;;  %s4648_s5 = int_to_ptr.vmem [resolvable:$false] %s4647_s5 }
  0x92   : > { %s4649_s18 = scalar_lea.vmem %s4648_s5, 512  ;;  %p4650_p4 = scmp.lt.s32.totalorder %s5158_s11, %s4648_s5 }
  0x93   : > { %p4645_p3 = pnand %p4643_p6, %p5121_p2  ;;  %p4651_p8 = scmp.lt.s32.totalorder %s4649_s18, %s4642_s1 }
  0x95   : > { %p4646_p5 = pneg %p4645_p3  ;;  %p4652_p13 = por %p4651_p8, %p4650_p4 }
  0x97   : > { %p4653_p9 = pnand %p4652_p13, %p4646_p5 }
  0x99   : > { %4656 = shalt.err (!%p4653_p9)
}
  0x9a   : > { %s5717_s24 = smov 128   ;;  %s4896_s23 = smov 8  }
  0x9b   : > { %4264 = dma.hbm_to_vmem [thread:$0]  (!%p5096_p0), %s5154_s29, 256, %s5158_s11, %s5162_s9, %s5717_s24, %s5717_s24, %s4896_s23  }
  0x9c   : > { %s5755_s30 = sshll.u32 %s4885_s12, 8  ;;  %s5756_s26 = sshll.u32 %s5092_s22, 4 }
  0x9d   : > { %s5194_s1 = scalar_lea.hbm %s5677_s4, %s5755_s30  ;;  %s434_s5 = scalar_lea.vmem [#allocation10], %s5756_s26 }
  0x9e   : > { %s441_s18 = sshll.u32 %s434_s5, 4  ;;  %s4897_s3 = smov [#allocation13]   ;;  %s5198_s18 = int_to_ptr.vmem [resolvable:$true] %s441_s18 }
  0x9f   : > { %s303_s13 = sshll.u32 %s4897_s3, 4  ;;  %s4898_s15 = smov [#allocation16]   ;;  %s304_s13 = int_to_ptr.vmem [resolvable:$true] %s303_s13 }
  0xa0   : > { %s329_s10 = sshll.u32 %s4898_s15, 4  ;;  %s4657_s11 = scalar_lea.hbm %s5679_s6, 8192  ;;  %s330_s10 = int_to_ptr.vmem [resolvable:$true] %s329_s10 }
  0xa1   : > { %p4658_p11 = scmp.ne.s32.totalorder %s5679_s6, %s4657_s11  ;;  %p5757_p10 = scmp.ne.s32.totalorder %s5739_s28, 0 }
  0xa2   : > { %p4664_p1 = scmp.lt.u32.totalorder %s4657_s11, %s5679_s6 }
  0xa3   : > { %p4660_p7 = pnand %p4658_p11, %p5757_p10 }
  0xa5   : > { %p4661_p12 = pneg %p4660_p7 }
  0xa7   : > { %p4666_p6 = pnand %p4664_p1, %p4661_p12 }
  0xa9   : > { %4669 = shalt.err (!%p4666_p6)
}
  0xaa   : > { %s4670_s3 = scalar_lea.vmem %s304_s13, 8192  ;;  %p4678_p8 = scmp.lt.s32.totalorder %s304_s13, %s304_s13 }
  0xab   : > { %p4671_p3 = scmp.ne.s32.totalorder %s304_s13, %s4670_s3  ;;  %p4679_p13 = scmp.lt.s32.totalorder %s4670_s3, %s4670_s3 }
  0xad   : > { %p4673_p5 = pnand %p4671_p3, %p5757_p10  ;;  %p4680_p9 = por %p4679_p13, %p4678_p8 }
  0xaf   : > { %p4674_p4 = pneg %p4673_p5 }
  0xb1   : > { %p4681_p0 = pnand %p4680_p9, %p4674_p4 }
  0xb3   : > { %4684 = shalt.err (!%p4681_p0)
}
  0xb4   : > { %p5758_p11 = scmp.ne.s32.totalorder %s5737_s20, 0  ;;  %s5759_s7 = smov 4  }
  0xb5   : > { %s5760_s15 = smov 64   ;;  %s4685_s5 = scalar_lea.hbm %s5681_s8, 8192 }
  0xb6   : > { %4245 = dma.hbm_to_vmem [thread:$0]  (!%p5758_p11), %s5679_s6, 8192, %s304_s13, [#allocation12], %s5760_s15, %s5760_s15, %s5759_s7  }
  0xb7   : > { %p4686_p7 = scmp.ne.s32.totalorder %s5681_s8, %s4685_s5  ;;  %p4692_p1 = scmp.lt.u32.totalorder %s4685_s5, %s5681_s8 }
  0xb9   : > { %p4688_p0 = pnand %p4686_p7, %p5757_p10 }
  0xbb   : > { %p4689_p12 = pneg %p4688_p0 }
  0xbd   : > { %p4694_p6 = pnand %p4692_p1, %p4689_p12 }
  0xbf   : > { %4697 = shalt.err (!%p4694_p6)
}
  0xc0   : > { %s4698_s3 = scalar_lea.vmem %s330_s10, 8192  ;;  %p4706_p8 = scmp.lt.s32.totalorder %s330_s10, %s330_s10 }
  0xc1   : > { %p4699_p3 = scmp.ne.s32.totalorder %s330_s10, %s4698_s3  ;;  %p4707_p13 = scmp.lt.s32.totalorder %s4698_s3, %s4698_s3 }
  0xc3   : > { %p4701_p5 = pnand %p4699_p3, %p5757_p10  ;;  %p4708_p9 = por %p4707_p13, %p4706_p8 }
  0xc5   : > { %p4702_p4 = pneg %p4701_p5 }
  0xc7   : > { %p4709_p2 = pnand %p4708_p9, %p4702_p4 }
  0xc9   : > { %4712 = shalt.err (!%p4709_p2)
}
  0xca   : > { %4251 = dma.hbm_to_vmem [thread:$0]  (!%p5758_p11), %s5681_s8, 8192, %s330_s10, [#allocation15], %s5751_s16, %s5751_s16, %s5750_s14  }
  0xcb   : > { %s5761_s28 = sshll.u32 %s4885_s12, 10  ;;  %s5762_s26 = sshll.u32 %s5092_s22, 6 }
  0xcc   : > { %s5247_s19 = scalar_lea.hbm %s5673_s0, %s5761_s28  ;;  %s347_s20 = scalar_lea.vmem [#allocation2], %s5762_s26 }
  0xcd   : > { %s355_s5 = sshll.u32 %s347_s20, 4  ;;  %s3732_s11 = sshll.u32 %s5092_s22, 7  ;;  %s5252_s5 = int_to_ptr.vmem [resolvable:$true] %s355_s5 }
  0xce   : > { %s344_s29 = scalar_lea.sflag [#allocation3], %s5092_s22  ;;  %s4713_s30 = scalar_lea.hbm %s5247_s19, 1024 }
  0xcf   : > { %p4714_p2 = scmp.ne.s32.totalorder %s5247_s19, %s4713_s30  ;;  %p5763_p10 = scmp.ne.s32.totalorder %s5749_s21, 0 }
  0xd0   : > { %s4718_s3 = scalar_lea.hbm %s5673_s0, 2048  ;;  %p4719_p0 = scmp.lt.u32.totalorder %s5247_s19, %s5673_s0 }
  0xd1   : > { %p4716_p11 = pnand %p4714_p2, %p5763_p10  ;;  %p4720_p12 = scmp.lt.u32.totalorder %s4718_s3, %s4713_s30 }
  0xd2   : > { %p4722_p6 = scmp.lt.u32.totalorder %s4713_s30, %s5247_s19 }
  0xd3   : > { %p4717_p7 = pneg %p4716_p11  ;;  %p4721_p1 = por %p4720_p12, %p4719_p0 }
  0xd5   : > { %p4723_p3 = por %p4722_p6, %p4721_p1 }
  0xd7   : > { %p4724_p5 = pnand %p4723_p3, %p4717_p7 }
  0xd9   : > { %4727 = shalt.err (!%p4724_p5)
}
  0xda   : > { %s4728_s28 = scalar_lea.vmem %s5252_s5, 1024  ;;  %s4899_s17 = smov [#allocation2]  }
  0xdb   : > { %p4729_p4 = scmp.ne.s32.totalorder %s5252_s5, %s4728_s28  ;;  %s4733_s24 = sshll.u32 %s4899_s17, 4  ;;  %s4734_s24 = int_to_ptr.vmem [resolvable:$false] %s4733_s24 }
  0xdc   : > { %s4735_s26 = scalar_lea.vmem %s4734_s24, 2048  ;;  %p4736_p9 = scmp.lt.s32.totalorder %s5252_s5, %s4734_s24 }
  0xdd   : > { %p4731_p8 = pnand %p4729_p4, %p5763_p10  ;;  %p4737_p2 = scmp.lt.s32.totalorder %s4735_s26, %s4728_s28 }
  0xdf   : > { %p4732_p13 = pneg %p4731_p8  ;;  %p4738_p11 = por %p4737_p2, %p4736_p9 }
  0xe1   : > { %p4739_p0 = pnand %p4738_p11, %p4732_p13 }
  0xe3   : > { %4742 = shalt.err (!%p4739_p0)
}
  0xe4   : > { %p5764_p7 = scmp.ne.s32.totalorder %s5746_s25, 0  ;;  %s4024_s20 = sshll.u32 %s4885_s12, 11 }
  0xe5   : > { %s391_s30 = scalar_lea.vmem [#allocation7], %s3732_s11  ;;  %s5287_s13 = scalar_lea.hbm %s5675_s2, %s4024_s20 }
  0xe6   : > { %4255 = dma.hbm_to_vmem [thread:$0]  (!%p5764_p7), %s5247_s19, 1024, %s5252_s5, %s344_s29, %s5751_s16, %s5751_s16, %s5750_s14  }
  0xe7   : > { %s399_s10 = sshll.u32 %s391_s30, 4  ;;  %s4743_s7 = scalar_lea.hbm %s5287_s13, 2048  ;;  %s5289_s10 = int_to_ptr.vmem [resolvable:$true] %s399_s10 }
  0xe8   : > { %p4744_p12 = scmp.ne.s32.totalorder %s5287_s13, %s4743_s7  ;;  %s4748_s16 = scalar_lea.hbm %s5675_s2, 4096 }
  0xe9   : > { %p4749_p3 = scmp.lt.u32.totalorder %s5287_s13, %s5675_s2  ;;  %p4750_p5 = scmp.lt.u32.totalorder %s4748_s16, %s4743_s7 }
  0xea   : > { %p4746_p1 = pnand %p4744_p12, %p5763_p10  ;;  %p4752_p8 = scmp.lt.u32.totalorder %s4743_s7, %s5287_s13 }
  0xeb   : > { %p4751_p4 = por %p4750_p5, %p4749_p3 }
  0xec   : > { %p4747_p6 = pneg %p4746_p1 }
  0xed   : > { %p4753_p13 = por %p4752_p8, %p4751_p4 }
  0xef   : > { %p4754_p9 = pnand %p4753_p13, %p4747_p6 }
  0xf1   : > { %4757 = shalt.err (!%p4754_p9)
}
  0xf2   : > { %s4758_s11 = scalar_lea.vmem %s5289_s10, 2048  ;;  %s4900_s29 = smov [#allocation7]  }
  0xf3   : > { %p4759_p2 = scmp.ne.s32.totalorder %s5289_s10, %s4758_s11  ;;  %s4763_s28 = sshll.u32 %s4900_s29, 4  ;;  %s4764_s28 = int_to_ptr.vmem [resolvable:$false] %s4763_s28 }
  0xf4   : > { %s4765_s17 = scalar_lea.vmem %s4764_s28, 4096  ;;  %p4766_p12 = scmp.lt.s32.totalorder %s5289_s10, %s4764_s28 }
  0xf5   : > { %p4761_p11 = pnand %p4759_p2, %p5763_p10  ;;  %p4767_p1 = scmp.lt.s32.totalorder %s4765_s17, %s4758_s11 }
  0xf7   : > { %p4762_p0 = pneg %p4761_p11  ;;  %p4768_p3 = por %p4767_p1, %p4766_p12 }
  0xf9   : > { %p4769_p5 = pnand %p4768_p3, %p4762_p0 }
  0xfb   : > { %4772 = shalt.err (!%p4769_p5)
}
  0xfc   : > { %s4901_s24 = smov 1024   ;;  %s5765_s26 = sld [smem:[#allocation34_spill]] }
  0xfd   : > { %s4773_s20 = scalar_lea.hbm %s5194_s1, 256  ;;  %s4778_s3 = scalar_lea.hbm %s5677_s4, 512 }
  0xfe   : > { %p4774_p6 = scmp.ne.s32.totalorder %s5194_s1, %s4773_s20  ;;  %p4779_p13 = scmp.lt.u32.totalorder %s5194_s1, %s5677_s4 }
  0xff   : > { %p4780_p9 = scmp.lt.u32.totalorder %s4778_s3, %s4773_s20  ;;  %p4782_p11 = scmp.lt.u32.totalorder %s4773_s20, %s5194_s1 }
 0x100   : > { %p4776_p4 = pnand %p4774_p6, %p5763_p10 }
 0x101   : > { %p4781_p2 = por %p4780_p9, %p4779_p13 }
 0x102   : > { %4261 = dma.hbm_to_vmem [thread:$0]  (!%p5764_p7), %s5287_s13, 2048, %s5289_s10, %s5765_s26, %s4901_s24, %s4901_s24, %s5760_s15  }
 0x103   : > { %p4777_p8 = pneg %p4776_p4  ;;  %p4783_p0 = por %p4782_p11, %p4781_p2 }
 0x105   : > { %p4784_p12 = pnand %p4783_p0, %p4777_p8 }
 0x107   : > { %4787 = shalt.err (!%p4784_p12)
}
 0x108   : > { %s4788_s15 = scalar_lea.vmem %s5198_s18, 256  ;;  %s4902_s10 = smov [#allocation10]  }
 0x109   : > { %p4789_p1 = scmp.ne.s32.totalorder %s5198_s18, %s4788_s15  ;;  %s4793_s13 = sshll.u32 %s4902_s10, 4  ;;  %s4794_s13 = int_to_ptr.vmem [resolvable:$false] %s4793_s13 }
 0x10a   : > { %s4795_s22 = scalar_lea.vmem %s4794_s13, 512  ;;  %p4796_p6 = scmp.lt.s32.totalorder %s5198_s18, %s4794_s13 }
 0x10b   : > { %p4791_p3 = pnand %p4789_p1, %p5763_p10  ;;  %p4797_p4 = scmp.lt.s32.totalorder %s4795_s22, %s4788_s15 }
 0x10d   : > { %p4792_p5 = pneg %p4791_p3  ;;  %p4798_p13 = por %p4797_p4, %p4796_p6 }
 0x10f   : > { %p4799_p9 = pnand %p4798_p13, %p4792_p5 }
 0x111   : > { %4802 = shalt.err (!%p4799_p9)
}
 0x112   : > { %s5766_s16 = smov 128   ;;  %s5767_s21 = sld [smem:[#allocation30_spill]] }
 0x113   : > { %4267 = dma.hbm_to_vmem [thread:$0]  (!%p5764_p7), %s5194_s1, 256, %s5198_s18, %s5162_s9, %s5766_s16, %s5766_s16, %s4896_s23  }
 0x118   : > { %p5768_p10 = scmp.ne.s32.totalorder %s5767_s21, 0 }
 0x119   : > { %s5769_s19 = sld [smem:[#allocation25_spill]] (!%p5768_p10)  ;;  %s5770_s5 = sld [smem:[#allocation28_spill]] (!%p5768_p10) }
 0x11a   : > { %453 = sbr.rel (%p5768_p10) target bundleno = 1566 (0x61e), region = 56 }
 0x11f   : > { %s5342_s11 = sand.u32 (!%p5768_p10), 1, %s5769_s19   ;;  %p5771_p8 = scmp.ne.s32.totalorder (!%p5768_p10), %s5770_s5, 0 }
 0x120   : > { %s3743_s29 = sshll.u32 (!%p5768_p10), %s5342_s11, 6  ;;  %s456_s28 = scalar_lea.sflag (!%p5768_p10), [#allocation3], %s5342_s11 }
 0x121   : > { %s5346_s17 = scalar_lea.vmem [#allocation2], %s3743_s29 }
 0x122   : > { %4848 = dma.done.wait (%p5771_p8), %s456_s28, 1024  }
 0x123   : > { %4850 = vsyncadd (%p5771_p8), %s456_s28, 4294966272  ;;  %s5772_s25 = sld [smem:[#allocation27_spill]]  ;;  %s5353_s1 = scalar_lea.vmem [#allocation5], %s3743_s29 }
 0x129   : > { %s464_s9 = sand.u32 1, %s5772_s25  }
 0x12a   : > { %s465_s23 = scalar_lea.sflag [#allocation6], %s464_s9 }
 0x12b   : > { %4852 = dma.done.wait (%p5771_p8), %s465_s23, 3072  }
 0x12c   : > { %4854 = vsyncadd (%p5771_p8), %s465_s23, 4294964224  ;;  %s3745_s18 = sshll.u32 %s5342_s11, 7  ;;  %s3746_s24 = sshll.u32 %s5342_s11, 4 }
 0x12d   : > { %s5361_s26 = scalar_lea.vmem [#allocation7], %s3745_s18  ;;  %s483_s20 = scalar_lea.sflag [#allocation9], %s464_s9 }
 0x12e   : > { %s5363_s30 = scalar_lea.vmem [#allocation8], %s3746_s24 }
 0x12f   : > { %4856 = dma.done.wait (%p5771_p8), %s483_s20, 512  }
 0x130   : > { %4858 = vsyncadd (%p5771_p8), %s483_s20, 4294966784  ;;  %s5369_s27 = scalar_lea.vmem [#allocation10], %s3746_s24  ;;  %p5773_p7 = scmp.eq.s32.totalorder %s5772_s25, 0 }
 0x132   : > { %4860 = dma.done.wait (%p5773_p7), [#allocation12], 16384   ;;  %p5774_p2 = pmov %p5773_p7 }
 0x134   : > { %4862 = vsyncadd (%p5774_p2), [#allocation12], 4294950912  ;;  %p5775_p11 = pmov %p5774_p2 }
 0x135   : > { %p5776_p0 = pmov %p5774_p2 }
 0x136   : > { %4864 = dma.done.wait (%p5775_p11), [#allocation15], 16384  }
 0x137   : > { %4866 = vsyncadd (%p5776_p0), [#allocation15], 4294950912  ;;  %v4903_v0 = vmov 1   ;;  %v4904_v1 = vmov 0   ;;  %v571_v2 = vld [vmem:[%s5363_s30] sm:$0xff]  ;;  %v572_v3 = vld [vmem:[%s5363_s30 + $0x8] sm:$0xff] }
 0x138   : > { %4329 = vset.pattern.permute.xlu1 %v4903_v0  ;;  %4328 = vset.pattern.permute.xlu0 %v4904_v1  ;;  %v4331_v4 = vld [vmem:[#allocation13 + $0x40] sm:$0xff]   ;;  %v4335_v8 = vld [vmem:[#allocation13 + $0x48] sm:$0xff]   ;;  %v4339_v12 = vld [vmem:[#allocation13 + $0x50] sm:$0xff]   ;;  %s4905_s3 = smov 126   ;;  %vm3416_vm0 = vcmask 7168   ;;  %s4016_s13 = sshll.u32 %s5772_s25, 4 }
 0x139   : > { %640 = vperm.xlu1 %4329, %v571_v2   ;;  %615 = vperm.xlu0 %4328, %v571_v2   ;;  %v4332_v5 = vld [vmem:[#allocation13] sm:$0xff]   ;;  %v4336_v9 = vld [vmem:[#allocation13 + $0x8] sm:$0xff]   ;;  %v4340_v13 = vld [vmem:[#allocation13 + $0x10] sm:$0xff]   ;;  %s564_s22 = scalar_lea.vmem [#allocation17], %s5342_s11  ;;  %s5777_s16 = sld [smem:[#allocation33_spill]] }
 0x13a   : > { %4027 = vmatprep.subr.bf16.mxu0 %v4331_v4  ;;  %v4333_v6 = vld [vmem:[#allocation13 + $0xc0] sm:$0xff]   ;;  %v4337_v10 = vld [vmem:[#allocation13 + $0xc8] sm:$0xff]   ;;  %v4341_v14 = vld [vmem:[#allocation13 + $0xd0] sm:$0xff]   ;;  %s3527_s21 = sshll.u32 %s564_s22, 4  ;;  %s5778_s29 = sld [smem:[#allocation39_spill]]  ;;  %s5631_s21 = int_to_ptr.vmem [resolvable:$true] %s3527_s21 }
 0x13b   : > { %4028 = vmatpush3.bf16.msra.mxu0 %v4332_v5  ;;  %v4334_v7 = vld [vmem:[#allocation13 + $0x80] sm:$0xff]   ;;  %4049 = vmatprep.subr.bf16.mxu1 %v4333_v6  ;;  %v4338_v11 = vld [vmem:[#allocation13 + $0x88] sm:$0xff]   ;;  %v4342_v15 = vld [vmem:[#allocation13 + $0x90] sm:$0xff]   ;;  %s4803_s25 = scalar_lea.vmem %s5631_s21, 16  ;;  %s4906_s9 = smov [#allocation17]  }
 0x13c   : > { %4050 = vmatpush3.bf16.msra.mxu1 %v4334_v7  ;;  %4029 = vmatprep.subr.bf16.mxu0 %v4335_v8  ;;  %v4343_v16 = vld [vmem:[#allocation13 + $0x58] sm:$0xff]   ;;  %v4347_v20 = vld [vmem:[#allocation13 + $0x60] sm:$0xff]   ;;  %v4351_v24 = vld [vmem:[#allocation13 + $0x68] sm:$0xff]   ;;  %p4804_p12 = scmp.ne.s32.totalorder %s5631_s21, %s4803_s25  ;;  %s4807_s23 = sshll.u32 %s4906_s9, 4  ;;  %s4808_s23 = int_to_ptr.vmem [resolvable:$false] %s4807_s23 }
 0x13d   : > { %644 = vperm.xlu1 %4329, %v572_v3   ;;  %620 = vperm.xlu0 %4328, %v572_v3   ;;  %v4344_v17 = vld [vmem:[#allocation13 + $0x18] sm:$0xff]   ;;  %v4348_v21 = vld [vmem:[#allocation13 + $0x20] sm:$0xff]   ;;  %v4352_v25 = vld [vmem:[#allocation13 + $0x28] sm:$0xff]   ;;  %p4810_p6 = scmp.lt.s32.totalorder %s5631_s21, %s4808_s23 }
 0x13e   : > { %4051 = vmatprep.subr.bf16.mxu1 %v4337_v10  ;;  %v4345_v18 = vld [vmem:[#allocation13 + $0xd8] sm:$0xff]   ;;  %v4349_v22 = vld [vmem:[#allocation13 + $0xe0] sm:$0xff]   ;;  %v4353_v26 = vld [vmem:[#allocation13 + $0xe8] sm:$0xff]  }
 0x13f   : > { %4030 = vmatpush3.bf16.msra.mxu0 %v4336_v9  ;;  %v4346_v19 = vld [vmem:[#allocation13 + $0x98] sm:$0xff]   ;;  %v4350_v23 = vld [vmem:[#allocation13 + $0xa0] sm:$0xff]   ;;  %v4354_v27 = vld [vmem:[#allocation13 + $0xa8] sm:$0xff]   ;;  %p5779_p1 = scmp.ne.s32.totalorder %s5777_s16, 0 }
 0x140   : > { %4052 = vmatpush3.bf16.msra.mxu1 %v4338_v11  ;;  %4031 = vmatprep.subr.bf16.mxu0 %v4339_v12  ;;  %v4355_v28 = vld [vmem:[#allocation13 + $0x70] sm:$0xff]   ;;  %v4359_v32 = vld [vmem:[#allocation13 + $0x78] sm:$0xff]   ;;  %v815_v36 = vld [vmem:[%s5353_s1] sm:$0xff]  ;;  %s5629_s28 = scalar_lea.hbm %s5778_s29, %s4016_s13 }
 0x141   : > { %4330 = vset.pattern.permute.xlu0 %v4903_v0  ;;  %4053 = vmatprep.subr.bf16.mxu1 %v4341_v14  ;;  %v4356_v29 = vld [vmem:[#allocation13 + $0x30] sm:$0xff]   ;;  %v4360_v33 = vld [vmem:[#allocation13 + $0x38] sm:$0xff]   ;;  %v819_v37 = vld [vmem:[%s5353_s1 + $0x20] sm:$0xff]  ;;  %p4805_p3 = pnand %p4804_p12, %p5779_p1 }
 0x142   : > { %v4357_v30 = vld [vmem:[#allocation13 + $0xf0] sm:$0xff]   ;;  %v4361_v34 = vld [vmem:[#allocation13 + $0xf8] sm:$0xff]   ;;  %v3752_v38 = vcombine.low %v815_v36, %v819_v37  ;;  %v3753_v39 = vcombine.high %v815_v36, %v819_v37  ;;  %v4363_v40 = vld [vmem:[#allocation13 + $0x140] sm:$0xff]  }
 0x143   : > { %4032 = vmatpush3.bf16.msra.mxu0 %v4340_v13  ;;  %v4358_v31 = vld [vmem:[#allocation13 + $0xb0] sm:$0xff]   ;;  %v4362_v35 = vld [vmem:[#allocation13 + $0xb8] sm:$0xff]   ;;  %v4364_v41 = vld [vmem:[#allocation13 + $0x100] sm:$0xff]   ;;  %p4806_p5 = pneg %p4805_p3 }
 0x144   : > { %4054 = vmatpush3.bf16.msra.mxu1 %v4342_v15  ;;  %4033 = vmatprep.subr.bf16.mxu0 %v4343_v16  ;;  %v816_v42 = vld [vmem:[%s5353_s1 + $0x8] sm:$0xff]  ;;  %v4365_v46 = vld [vmem:[#allocation13 + $0x1c0] sm:$0xff]   ;;  %v4371_v52 = vld [vmem:[#allocation13 + $0x150] sm:$0xff]  }
 0x145   : > { %4055 = vmatprep.subr.bf16.mxu1 %v4345_v18  ;;  %v820_v43 = vld [vmem:[%s5353_s1 + $0x28] sm:$0xff]  ;;  %1407 = vmatprep.mubr.bf16.mxu0 %v3753_v39  ;;  %v4366_v47 = vld [vmem:[#allocation13 + $0x180] sm:$0xff]   ;;  %v4372_v53 = vld [vmem:[#allocation13 + $0x110] sm:$0xff]  }
 0x146   : > { %v3754_v44 = vcombine.low %v816_v42, %v820_v43  ;;  %v3755_v45 = vcombine.high %v816_v42, %v820_v43  ;;  %v4367_v48 = vld [vmem:[#allocation13 + $0x148] sm:$0xff]   ;;  %v4373_v54 = vld [vmem:[#allocation13 + $0x1d0] sm:$0xff]   ;;  %v4375_v56 = vld [vmem:[#allocation13 + $0x158] sm:$0xff]  }
 0x147   : > { %4034 = vmatpush3.bf16.msra.mxu0 %v4344_v17  ;;  %v4368_v49 = vld [vmem:[#allocation13 + $0x108] sm:$0xff]   ;;  %v4374_v55 = vld [vmem:[#allocation13 + $0x190] sm:$0xff]   ;;  %v4376_v57 = vld [vmem:[#allocation13 + $0x118] sm:$0xff]  }
 0x148   : > { %4056 = vmatpush3.bf16.msra.mxu1 %v4346_v19  ;;  %4035 = vmatprep.subr.bf16.mxu0 %v4347_v20  ;;  %v4369_v50 = vld [vmem:[#allocation13 + $0x1c8] sm:$0xff]   ;;  %v4377_v58 = vld [vmem:[#allocation13 + $0x1d8] sm:$0xff]   ;;  %v4379_v60 = vld [vmem:[#allocation13 + $0x160] sm:$0xff]  }
 0x149   : > { %4057 = vmatprep.subr.bf16.mxu1 %v4349_v22  ;;  %1448 = vmatprep.mubr.bf16.mxu1 %v3755_v45  ;;  %v4370_v51 = vld [vmem:[#allocation13 + $0x188] sm:$0xff]   ;;  %v4378_v59 = vld [vmem:[#allocation13 + $0x198] sm:$0xff]   ;;  %v4380_v61 = vld [vmem:[#allocation13 + $0x120] sm:$0xff]  }
 0x14a   : > { %v4381_v62 = vld [vmem:[#allocation13 + $0x1e0] sm:$0xff]   ;;  %v4383_v0 = vld [vmem:[#allocation13 + $0x168] sm:$0xff]   ;;  %v4387_v5 = vld [vmem:[#allocation13 + $0x170] sm:$0xff]  }
 0x14b   : > { %4036 = vmatpush3.bf16.msra.mxu0 %v4348_v21  ;;  %v4382_v63 = vld [vmem:[#allocation13 + $0x1a0] sm:$0xff]   ;;  %v4384_v2 = vld [vmem:[#allocation13 + $0x128] sm:$0xff]   ;;  %v4388_v6 = vld [vmem:[#allocation13 + $0x130] sm:$0xff]  }
 0x14c   : > { %4058 = vmatpush3.bf16.msra.mxu1 %v4350_v23  ;;  %4037 = vmatprep.subr.bf16.mxu0 %v4351_v24  ;;  %v4385_v3 = vld [vmem:[#allocation13 + $0x1e8] sm:$0xff]   ;;  %v4389_v7 = vld [vmem:[#allocation13 + $0x1f0] sm:$0xff]   ;;  %v4391_v9 = vld [vmem:[#allocation13 + $0x178] sm:$0xff]  }
 0x14d   : > { %4059 = vmatprep.subr.bf16.mxu1 %v4353_v26  ;;  %v4386_v4 = vld [vmem:[#allocation13 + $0x1a8] sm:$0xff]   ;;  %v4390_v8 = vld [vmem:[#allocation13 + $0x1b0] sm:$0xff]   ;;  %v4392_v10 = vld [vmem:[#allocation13 + $0x138] sm:$0xff]  }
 0x14e   : > { %v4393_v11 = vld [vmem:[#allocation13 + $0x1f8] sm:$0xff]   ;;  %v817_v12 = vld [vmem:[%s5353_s1 + $0x10] sm:$0xff]  ;;  %v4395_v21 = vld [vmem:[#allocation11 + $0x40] sm:$0xff]  }
 0x14f   : > { %4038 = vmatpush3.bf16.msra.mxu0 %v4352_v25  ;;  %v821_v13 = vld [vmem:[%s5353_s1 + $0x30] sm:$0xff]  ;;  %v4394_v16 = vld [vmem:[#allocation13 + $0x1b8] sm:$0xff]   ;;  %v4396_v22 = vld [vmem:[#allocation11 + $0xc0] sm:$0xff]  }
 0x150   : > { %4060 = vmatpush3.bf16.msra.mxu1 %v4354_v27  ;;  %4039 = vmatprep.subr.bf16.mxu0 %v4355_v28  ;;  %v3756_v14 = vcombine.low %v817_v12, %v821_v13  ;;  %v3757_v15 = vcombine.high %v817_v12, %v821_v13  ;;  %v818_v17 = vld [vmem:[%s5353_s1 + $0x18] sm:$0xff]  ;;  %v4397_v23 = vld [vmem:[#allocation11] sm:$0xff]   ;;  %v4399_v25 = vld [vmem:[#allocation11 + $0x48] sm:$0xff]  }
 0x151   : > { %4061 = vmatprep.subr.bf16.mxu1 %v4357_v30  ;;  %v822_v18 = vld [vmem:[%s5353_s1 + $0x38] sm:$0xff]  ;;  %v4398_v24 = vld [vmem:[#allocation11 + $0x80] sm:$0xff]   ;;  %v4400_v26 = vld [vmem:[#allocation11 + $0xc8] sm:$0xff]   ;;  %s4809_s1 = scalar_lea.vmem %s4808_s23, 32 }
 0x152   : > { %v3758_v19 = vcombine.low %v818_v17, %v822_v18  ;;  %v3759_v20 = vcombine.high %v818_v17, %v822_v18  ;;  %v4401_v27 = vld [vmem:[#allocation11 + $0x8] sm:$0xff]   ;;  %v4404_v30 = vld [vmem:[#allocation11 + $0xd0] sm:$0xff]   ;;  %v4410_v36 = vld [vmem:[#allocation11 + $0x98] sm:$0xff]   ;;  %p4811_p4 = scmp.lt.s32.totalorder %s4809_s1, %s4803_s25 }
 0x153   : > { %4040 = vmatpush3.bf16.msra.mxu0 %v4356_v29  ;;  %v4402_v28 = vld [vmem:[#allocation11 + $0x88] sm:$0xff]   ;;  %v4403_v29 = vld [vmem:[#allocation11 + $0x50] sm:$0xff]   ;;  %v4411_v37 = vld [vmem:[#allocation11 + $0x60] sm:$0xff]  }
 0x154   : > { %4062 = vmatpush3.bf16.msra.mxu1 %v4358_v31  ;;  %4041 = vmatprep.subr.bf16.mxu0 %v4359_v32  ;;  %v4405_v31 = vld [vmem:[#allocation11 + $0x10] sm:$0xff]   ;;  %v4413_v39 = vld [vmem:[#allocation11 + $0x20] sm:$0xff]   ;;  %v4416_v42 = vld [vmem:[#allocation11 + $0xe8] sm:$0xff]   ;;  %p4812_p13 = por %p4811_p4, %p4810_p6 }
 0x155   : > { %4063 = vmatprep.subr.bf16.mxu1 %v4361_v34  ;;  %v4406_v32 = vld [vmem:[#allocation11 + $0x90] sm:$0xff]   ;;  %v4408_v34 = vld [vmem:[#allocation11 + $0xd8] sm:$0xff]   ;;  %v4417_v43 = vld [vmem:[#allocation11 + $0x28] sm:$0xff]  }
 0x156   : > { %v4419_v45 = vld [vmem:[#allocation11 + $0x70] sm:$0xff]   ;;  %v606_v13 = vld [vmem:[%s5361_s26 + $0x48] sm:$0xff]  ;;  %p4813_p9 = pnand %p4812_p13, %p4806_p5 }
 0x157   : > { %4042 = vmatpush3.bf16.msra.mxu0 %v4360_v33  ;;  %v4407_v33 = vld [vmem:[#allocation11 + $0x58] sm:$0xff]   ;;  %v602_v18 = vld [vmem:[%s5361_s26 + $0x28] sm:$0xff] }
 0x158   : > { %4064 = vmatpush3.bf16.msra.mxu1 %v4362_v35  ;;  %4071 = vmatprep.subr.bf16.mxu0 %v4363_v40  ;;  %v4409_v35 = vld [vmem:[#allocation11 + $0x18] sm:$0xff]   ;;  %v4414_v40 = vld [vmem:[#allocation11 + $0xa0] sm:$0xff]  }
 0x159   : > { %4093 = vmatprep.subr.bf16.mxu1 %v4365_v46  ;;  %v4420_v46 = vld [vmem:[#allocation11 + $0xf0] sm:$0xff]  }
 0x15a   : > { %1408 = vmatmul.mubr.bf16.vlgmr.msra.gmra.mrb[0].mxu0 %v3752_v38  ;;  %v4412_v38 = vld [vmem:[#allocation11 + $0xe0] sm:$0xff]  }
 0x15b   : > { %4072 = vmatpush3.bf16.msra.mxu0 %v4364_v41  ;;  %1449 = vmatmul.mubr.bf16.vlgmr.msra.gmra.mrb[0].mxu1 %v3754_v44  ;;  %v4415_v41 = vld [vmem:[#allocation11 + $0x68] sm:$0xff]  }
 0x15c   : > { %4094 = vmatpush3.bf16.msra.mxu1 %v4366_v47  ;;  %4073 = vmatprep.subr.bf16.mxu0 %v4367_v48  ;;  %v4418_v44 = vld [vmem:[#allocation11 + $0xa8] sm:$0xff]   ;;  %v4421_v47 = vld [vmem:[#allocation11 + $0x30] sm:$0xff]  }
 0x15d   : > { %4095 = vmatprep.subr.bf16.mxu1 %v4369_v50  ;;  %1489 = vmatprep.mubr.bf16.mxu0 %v3757_v15  ;;  %v4422_v48 = vld [vmem:[#allocation11 + $0xb0] sm:$0xff]   ;;  %v4424_v50 = vld [vmem:[#allocation11 + $0xf8] sm:$0xff]  }
 0x15e   : > { %1530 = vmatprep.mubr.bf16.mxu1 %v3759_v20 }
 0x15f   : > { %4074 = vmatpush3.bf16.msra.mxu0 %v4368_v49  ;;  %v4423_v49 = vld [vmem:[#allocation11 + $0x78] sm:$0xff]  }
 0x160   : > { %4096 = vmatpush3.bf16.msra.mxu1 %v4370_v51  ;;  %4075 = vmatprep.subr.bf16.mxu0 %v4371_v52  ;;  %v4425_v51 = vld [vmem:[#allocation11 + $0x38] sm:$0xff]  }
 0x161   : > { %4097 = vmatprep.subr.bf16.mxu1 %v4373_v54  ;;  %v4426_v52 = vld [vmem:[#allocation11 + $0xb8] sm:$0xff]   ;;  %v4428_v54 = vld [vmem:[#allocation11 + $0x1c0] sm:$0xff]  }
 0x163   : > { %4076 = vmatpush3.bf16.msra.mxu0 %v4372_v53  ;;  %v4427_v53 = vld [vmem:[#allocation11 + $0x140] sm:$0xff]  }
 0x164   : > { %4098 = vmatpush3.bf16.msra.mxu1 %v4374_v55  ;;  %4077 = vmatprep.subr.bf16.mxu0 %v4375_v56  ;;  %v573_v55 = vld [vmem:[%s5346_s17] sm:$0xff] }
 0x165   : > { %4099 = vmatprep.subr.bf16.mxu1 %v4377_v58  ;;  %v577_v56 = vld [vmem:[%s5346_s17 + $0x20] sm:$0xff]  ;;  %v578_v58 = vld [vmem:[%s5346_s17 + $0x28] sm:$0xff] }
 0x166   : > { %v5432_v15 = vunpack.c.h.bf16 %v578_v58 }
 0x167   : > { %4078 = vmatpush3.bf16.msra.mxu0 %v4376_v57  ;;  %v574_v57 = vld [vmem:[%s5346_s17 + $0x8] sm:$0xff] }
 0x168   : > { %4100 = vmatpush3.bf16.msra.mxu1 %v4378_v59  ;;  %4079 = vmatprep.subr.bf16.mxu0 %v4379_v60  ;;  %v5395_v59 = vld [vmem:[%s5346_s17 + $0x10] sm:$0xff]  ;;  %v598_v60 = vld [vmem:[%s5361_s26 + $0x8] sm:$0xff] }
 0x169   : > { %4101 = vmatprep.subr.bf16.mxu1 %v4381_v62  ;;  %v5400_v62 = vld [vmem:[%s5346_s17 + $0x30] sm:$0xff] }
 0x16a   : > { %v5436_v17 = vunpack.c.h.bf16 %v5400_v62 }
 0x16b   : > { %4080 = vmatpush3.bf16.msra.mxu0 %v4380_v61  ;;  %v600_v61 = vld [vmem:[%s5361_s26 + $0x18] sm:$0xff] }
 0x16c   : > { %4102 = vmatpush3.bf16.msra.mxu1 %v4382_v63  ;;  %4081 = vmatprep.subr.bf16.mxu0 %v4383_v0  ;;  %v5402_v63 = vunpack.c.h.bf16 %v573_v55  ;;  %v5404_v0 = vunpack.c.h.bf16 %v574_v57 }
 0x16d   : > { %4103 = vmatprep.subr.bf16.mxu1 %v4385_v3  ;;  %v5408_v3 = vld [vmem:[%s5346_s17 + $0x18] sm:$0xff] }
 0x16f   : > { %4082 = vmatpush3.bf16.msra.mxu0 %v4384_v2  ;;  %v597_v2 = vld [vmem:[%s5361_s26] sm:$0xff] }
 0x170   : > { %4104 = vmatpush3.bf16.msra.mxu1 %v4386_v4  ;;  %4083 = vmatprep.subr.bf16.mxu0 %v4387_v5  ;;  %v5410_v4 = vunpack.c.l.bf16 %v573_v55  ;;  %v5412_v5 = vunpack.c.l.bf16 %v574_v57 }
 0x171   : > { %4105 = vmatprep.subr.bf16.mxu1 %v4389_v7  ;;  %v5415_v7 = vunpack.c.l.bf16 %v577_v56 }
 0x173   : > { %4084 = vmatpush3.bf16.msra.mxu0 %v4388_v6  ;;  %v599_v6 = vld [vmem:[%s5361_s26 + $0x10] sm:$0xff] }
 0x174   : > { %4106 = vmatpush3.bf16.msra.mxu1 %v4390_v8  ;;  %4085 = vmatprep.subr.bf16.mxu0 %v4391_v9  ;;  %v5417_v8 = vunpack.c.h.bf16 %v577_v56  ;;  %v5420_v9 = vunpack.c.h.bf16 %v5395_v59 }
 0x175   : > { %4107 = vmatprep.subr.bf16.mxu1 %v4393_v11 }
 0x177   : > { %4086 = vmatpush3.bf16.msra.mxu0 %v4392_v10  ;;  %v5423_v10 = vld [vmem:[%s5346_s17 + $0x38] sm:$0xff]  ;;  %s3515_s17 = scalar_lea.sflag [#allocation4], %s5342_s11 }
 0x178   : > { %4108 = vmatpush3.bf16.msra.mxu1 %v4394_v16  ;;  %4115 = vmatprep.subr.bf16.mxu0 %v4395_v21  ;;  %v608_v16 = vld [vmem:[%s5361_s26 + $0x58] sm:$0xff] }
 0x179   : > { %4137 = vmatprep.subr.bf16.mxu1 %v4396_v22 }
 0x17a   : > { %1490 = vmatmul.mubr.bf16.vlgmr.msra.gmra.mrb[4].mxu0 %v3756_v14  ;;  %v5430_v14 = vunpack.c.l.bf16 %v578_v58  ;;  %v4429_v58 = vld [vmem:[#allocation11 + $0x100] sm:$0xff]  }
 0x17b   : > { %1531 = vmatmul.mubr.bf16.vlgmr.msra.gmra.mrb[4].mxu1 %v3758_v19  ;;  %4116 = vmatpush3.bf16.msra.mxu0 %v4397_v23  ;;  %v5440_v19 = vunpack.c.h.bf16 %v5408_v3 }
 0x17c   : > { %4138 = vmatpush3.bf16.msra.mxu1 %v4398_v24  ;;  %4117 = vmatprep.subr.bf16.mxu0 %v4399_v25  ;;  %v604_v24 = vld [vmem:[%s5361_s26 + $0x38] sm:$0xff]  ;;  %v605_v25 = vld [vmem:[%s5361_s26 + $0x40] sm:$0xff] }
 0x17d   : > { %4139 = vmatprep.subr.bf16.mxu1 %v4400_v26 }
 0x17f   : > { %4118 = vmatpush3.bf16.msra.mxu0 %v4401_v27 }
 0x180   : > { %4140 = vmatpush3.bf16.msra.mxu1 %v4402_v28  ;;  %4119 = vmatprep.subr.bf16.mxu0 %v4403_v29  ;;  %v5456_v29 = vunpack.c.h.bf16 %v5423_v10 }
 0x181   : > { %4141 = vmatprep.subr.bf16.mxu1 %v4404_v30 }
 0x183   : > { %4120 = vmatpush3.bf16.msra.mxu0 %v4405_v31 }
 0x184   : > { %4142 = vmatpush3.bf16.msra.mxu1 %v4406_v32  ;;  %4121 = vmatprep.subr.bf16.mxu0 %v4407_v33  ;;  %v607_v32 = vld [vmem:[%s5361_s26 + $0x50] sm:$0xff] }
 0x185   : > { %4143 = vmatprep.subr.bf16.mxu1 %v4408_v34 }
 0x187   : > { %4122 = vmatpush3.bf16.msra.mxu0 %v4409_v35 }
 0x188   : > { %4144 = vmatpush3.bf16.msra.mxu1 %v4410_v36  ;;  %4123 = vmatprep.subr.bf16.mxu0 %v4411_v37 }
 0x189   : > { %4145 = vmatprep.subr.bf16.mxu1 %v4412_v38  ;;  %v610_v38 = vld [vmem:[%s5361_s26 + $0x68] sm:$0xff] }
 0x18b   : > { %4124 = vmatpush3.bf16.msra.mxu0 %v4413_v39 }
 0x18c   : > { %4146 = vmatpush3.bf16.msra.mxu1 %v4414_v40  ;;  %4125 = vmatprep.subr.bf16.mxu0 %v4415_v41 }
 0x18d   : > { %4147 = vmatprep.subr.bf16.mxu1 %v4416_v42 }
 0x18f   : > { %4126 = vmatpush3.bf16.msra.mxu0 %v4417_v43 }
 0x190   : > { %4148 = vmatpush3.bf16.msra.mxu1 %v4418_v44  ;;  %4127 = vmatprep.subr.bf16.mxu0 %v4419_v45 }
 0x191   : > { %4149 = vmatprep.subr.bf16.mxu1 %v4420_v46 }
 0x193   : > { %4128 = vmatpush3.bf16.msra.mxu0 %v4421_v47 }
 0x194   : > { %4150 = vmatpush3.bf16.msra.mxu1 %v4422_v48  ;;  %4129 = vmatprep.subr.bf16.mxu0 %v4423_v49 }
 0x195   : > { %4151 = vmatprep.subr.bf16.mxu1 %v4424_v50  ;;  %v612_v50 = vld [vmem:[%s5361_s26 + $0x78] sm:$0xff] }
 0x197   : > { %4130 = vmatpush3.bf16.msra.mxu0 %v4425_v51 }
 0x198   : > { %4152 = vmatpush3.bf16.msra.mxu1 %v4426_v52  ;;  %4159 = vmatprep.subr.bf16.mxu0 %v4427_v53 }
 0x199   : > { %4181 = vmatprep.subr.bf16.mxu1 %v4428_v54 }
 0x1b8   : > { %v5425_v11 = vpop.permute.xlu1 %640  ;;  %v5427_v12 = vpop.permute.xlu0 %615 }
 0x1b9   : > { %v624_v20 = vmul.f32 %v5427_v12, %v5402_v63  ;;  %v648_v21 = vmul.f32 %v5425_v11, %v598_v60  ;;  %v626_v22 = vmul.f32 %v5427_v12, %v5404_v0  ;;  %v650_v23 = vmul.f32 %v5425_v11, %v600_v61 }
 0x1ba   : > { %v623_v26 = vmul.f32 %v5427_v12, %v5410_v4  ;;  %v647_v27 = vmul.f32 %v5425_v11, %v597_v2  ;;  %v625_v28 = vmul.f32 %v5427_v12, %v5412_v5  ;;  %v649_v33 = vmul.f32 %v5425_v11, %v599_v6  ;;  %v4430_v6 = vld [vmem:[#allocation11 + $0x180] sm:$0xff]  }
 0x1bb   : > { %v664_v30 = vadd.f32 %v648_v21, %v624_v20  ;;  %v666_v31 = vadd.f32 %v650_v23, %v626_v22  ;;  %v628_v34 = vmul.f32 %v5427_v12, %v5420_v9  ;;  %v652_v39 = vmul.f32 %v5425_v11, %v602_v18  ;;  %v4431_v22 = vld [vmem:[#allocation11 + $0x148] sm:$0xff]  }
 0x1bc   : > { %v5462_v35 = vpop.permute.xlu1 %644  ;;  %v5464_v36 = vpop.permute.xlu0 %620  ;;  %v663_v37 = vadd.f32 %v647_v27, %v623_v26  ;;  %v630_v40 = vmul.f32 %v5427_v12, %v5440_v19  ;;  %v654_v41 = vmul.f32 %v5425_v11, %v604_v24  ;;  %v665_v56 = vadd.f32 %v649_v33, %v625_v28  ;;  %v4433_v28 = vld [vmem:[#allocation11 + $0x108] sm:$0xff]   ;;  %v4437_v33 = vld [vmem:[#allocation11 + $0x110] sm:$0xff]  }
 0x1bd   : > { %v632_v42 = vmul.f32 %v5464_v36, %v5417_v8  ;;  %v656_v43 = vmul.f32 %v5462_v35, %v606_v13  ;;  %v634_v44 = vmul.f32 %v5464_v36, %v5432_v15  ;;  %v658_v45 = vmul.f32 %v5462_v35, %v608_v16 }
 0x1be   : > { %v631_v46 = vmul.f32 %v5464_v36, %v5415_v7  ;;  %v655_v47 = vmul.f32 %v5462_v35, %v605_v25  ;;  %v633_v48 = vmul.f32 %v5464_v36, %v5430_v14  ;;  %v657_v49 = vmul.f32 %v5462_v35, %v607_v32  ;;  %v4432_v25 = vld [vmem:[#allocation11 + $0x1c8] sm:$0xff]   ;;  %v4436_v32 = vld [vmem:[#allocation11 + $0x1d0] sm:$0xff]  }
 0x1bf   : > { %v672_v51 = vadd.f32 %v656_v43, %v632_v42  ;;  %v674_v52 = vadd.f32 %v658_v45, %v634_v44  ;;  %v636_v53 = vmul.f32 %v5464_v36, %v5436_v17  ;;  %v660_v54 = vmul.f32 %v5462_v35, %v610_v38  ;;  %v4440_v38 = vld [vmem:[#allocation11 + $0x1d8] sm:$0xff]   ;;  %v4444_v42 = vld [vmem:[#allocation11 + $0x1e0] sm:$0xff]   ;;  %v4447_v45 = vld [vmem:[#allocation11 + $0x168] sm:$0xff]  }
 0x1c0   : > { %v671_v55 = vadd.f32 %v655_v47, %v631_v46  ;;  %v673_v57 = vadd.f32 %v657_v49, %v633_v48  ;;  %v638_v60 = vmul.f32 %v5464_v36, %v5456_v29  ;;  %v662_v16 = vmul.f32 %v5462_v35, %v612_v50  ;;  %v4445_v43 = vld [vmem:[#allocation11 + $0x120] sm:$0xff]   ;;  %v4448_v46 = vld [vmem:[#allocation11 + $0x1e8] sm:$0xff]  }
 0x1c1   : > { %v680_v61 = vpack.c.bf16 %v672_v51, %v664_v30  ;;  %v682_v2 = vpack.c.bf16 %v674_v52, %v666_v31  ;;  %v676_v13 = vadd.f32 %v660_v54, %v636_v53  ;;  %v668_v21 = vadd.f32 %v652_v39, %v628_v34  ;;  %v4434_v30 = vld [vmem:[#allocation11 + $0x188] sm:$0xff]   ;;  %v4435_v31 = vld [vmem:[#allocation11 + $0x150] sm:$0xff]   ;;  %v4441_v39 = vld [vmem:[#allocation11 + $0x118] sm:$0xff]  }
 0x1c2   : > { %v679_v18 = vpack.c.bf16 %v671_v55, %v663_v37  ;;  %v681_v20 = vpack.c.bf16 %v673_v57, %v665_v56  ;;  %v670_v23 = vadd.f32 %v654_v41, %v630_v40  ;;  %v678_v24 = vadd.f32 %v662_v16, %v638_v60  ;;  %v4438_v34 = vld [vmem:[#allocation11 + $0x190] sm:$0xff]   ;;  %v4439_v37 = vld [vmem:[#allocation11 + $0x158] sm:$0xff]   ;;  %v4443_v41 = vld [vmem:[#allocation11 + $0x160] sm:$0xff]  }
 0x1c3   : > { %1955 = vmatprep.mubr.bf16.mxu0 %v680_v61  ;;  %1996 = vmatprep.mubr.bf16.mxu1 %v682_v2  ;;  %v684_v26 = vpack.c.bf16 %v676_v13, %v668_v21  ;;  %v4442_v40 = vld [vmem:[#allocation11 + $0x198] sm:$0xff]   ;;  %v4446_v44 = vld [vmem:[#allocation11 + $0x1a0] sm:$0xff]   ;;  %v5491_v47 = vunpack.c.l.bf16 %v5400_v62  ;;  %v4449_v48 = vld [vmem:[#allocation11 + $0x128] sm:$0xff]   ;;  %v5494_v50 = vunpack.c.l.bf16 %v5423_v10  ;;  %v5499_v55 = vunpack.c.l.bf16 %v5395_v59 }
 0x1c4   : > { %1956 = vmatmul.mubr.bf16.vlgmr.msra.gmra.mrb[8].mxu0 %v679_v18  ;;  %1997 = vmatmul.mubr.bf16.vlgmr.msra.gmra.mrb[8].mxu1 %v681_v20  ;;  %v686_v27 = vpack.c.bf16 %v678_v24, %v670_v23  ;;  %v4450_v49 = vld [vmem:[#allocation11 + $0x1a8] sm:$0xff]   ;;  %v4451_v51 = vld [vmem:[#allocation11 + $0x170] sm:$0xff]   ;;  %v609_v53 = vld [vmem:[%s5361_s26 + $0x60] sm:$0xff]  ;;  %v5502_v62 = vunpack.c.l.bf16 %v5408_v3 }
 0x1c5   : > { %4160 = vmatpush3.bf16.msra.mxu0 %v4429_v58  ;;  %4182 = vmatpush3.bf16.msra.mxu1 %v4430_v6  ;;  %v4452_v52 = vld [vmem:[#allocation11 + $0x1f0] sm:$0xff]   ;;  %v601_v58 = vld [vmem:[%s5361_s26 + $0x20] sm:$0xff]  ;;  %v635_v10 = vmul.f32 %v5464_v36, %v5491_v47  ;;  %v4455_v61 = vld [vmem:[#allocation11 + $0x178] sm:$0xff]   ;;  %v659_v6 = vmul.f32 %v5462_v35, %v609_v53  ;;  %v637_v59 = vmul.f32 %v5464_v36, %v5494_v50 }
 0x1c6   : > { %2037 = vmatprep.mubr.bf16.mxu0 %v684_v26  ;;  %4161 = vmatprep.subr.bf16.mxu0 %v4431_v22  ;;  %v611_v54 = vld [vmem:[%s5361_s26 + $0x70] sm:$0xff]  ;;  %v4456_v2 = vld [vmem:[#allocation11 + $0x1f8] sm:$0xff]   ;;  %v627_v13 = vmul.f32 %v5427_v12, %v5499_v55  ;;  %v651_v16 = vmul.f32 %v5425_v11, %v601_v58  ;;  %v629_v18 = vmul.f32 %v5427_v12, %v5502_v62  ;;  %v2098_v12 = vld [vmem:[#allocation14 + $0x20] sm:$0xff] }
 0x1c7   : > { %2078 = vmatprep.mubr.bf16.mxu1 %v686_v27  ;;  %4183 = vmatprep.subr.bf16.mxu1 %v4432_v25  ;;  %v4453_v56 = vld [vmem:[#allocation11 + $0x130] sm:$0xff]   ;;  %v661_v3 = vmul.f32 %v5462_v35, %v611_v54  ;;  %v4457_v21 = vld [vmem:[#allocation11 + $0x138] sm:$0xff]   ;;  %v675_v23 = vadd.f32 %v659_v6, %v635_v10  ;;  %v2095_v27 = vld [vmem:[#allocation14 + $0x8] sm:$0xff] }
 0x1c8   : > { %v4454_v57 = vld [vmem:[#allocation11 + $0x1b0] sm:$0xff]   ;;  %v4458_v22 = vld [vmem:[#allocation11 + $0x1b8] sm:$0xff]   ;;  %v667_v24 = vadd.f32 %v651_v16, %v627_v13  ;;  %v2122_v53 = vld [vmem:[#allocation14 + $0xe0] sm:$0xff] }
 0x1c9   : > { %4162 = vmatpush3.bf16.msra.mxu0 %v4433_v28  ;;  %4184 = vmatpush3.bf16.msra.mxu1 %v4434_v30  ;;  %v603_v60 = vld [vmem:[%s5361_s26 + $0x30] sm:$0xff]  ;;  %v677_v36 = vadd.f32 %v661_v3, %v637_v59  ;;  %v2119_v54 = vld [vmem:[#allocation14 + $0xc8] sm:$0xff] }
 0x1ca   : > { %4163 = vmatprep.subr.bf16.mxu0 %v4435_v31  ;;  %4185 = vmatprep.subr.bf16.mxu1 %v4436_v32  ;;  %v653_v20 = vmul.f32 %v5425_v11, %v603_v60  ;;  %v683_v25 = vpack.c.bf16 %v675_v23, %v667_v24  ;;  %v2094_v11 = vld [vmem:[#allocation14] sm:$0xff]  ;;  %v2099_v31 = vld [vmem:[#allocation14 + $0x28] sm:$0xff] }
 0x1cb   : > { %v3888_v28 = vcombine.low %v2094_v11, %v2098_v12  ;;  %v3889_v30 = vcombine.high %v2094_v11, %v2098_v12  ;;  %v2102_v32 = vld [vmem:[#allocation14 + $0x40] sm:$0xff]  ;;  %v2127_v6 = vld [vmem:[#allocation14 + $0x108] sm:$0xff] }
 0x1cc   : > { %v669_v35 = vadd.f32 %v653_v20, %v629_v18  ;;  %v2131_v59 = vld [vmem:[#allocation14 + $0x128] sm:$0xff] }
 0x1cd   : > { %4164 = vmatpush3.bf16.msra.mxu0 %v4437_v33  ;;  %4186 = vmatpush3.bf16.msra.mxu1 %v4438_v34  ;;  %v2106_v33 = vld [vmem:[#allocation14 + $0x60] sm:$0xff]  ;;  %v3890_v34 = vcombine.low %v2095_v27, %v2099_v31  ;;  %v3923_v18 = vcombine.high %v2127_v6, %v2131_v59 }
 0x1ce   : > { %4165 = vmatprep.subr.bf16.mxu0 %v4439_v37  ;;  %4187 = vmatprep.subr.bf16.mxu1 %v4440_v38  ;;  %v685_v26 = vpack.c.bf16 %v677_v36, %v669_v35  ;;  %v3891_v37 = vcombine.high %v2095_v27, %v2099_v31  ;;  %v3897_v38 = vcombine.high %v2102_v32, %v2106_v33 }
 0x1d1   : > { %4166 = vmatpush3.bf16.msra.mxu0 %v4441_v39  ;;  %4188 = vmatpush3.bf16.msra.mxu1 %v4442_v40  ;;  %v2103_v39 = vld [vmem:[#allocation14 + $0x48] sm:$0xff] }
 0x1d2   : > { %4167 = vmatprep.subr.bf16.mxu0 %v4443_v41  ;;  %4189 = vmatprep.subr.bf16.mxu1 %v4444_v42  ;;  %v2107_v40 = vld [vmem:[#allocation14 + $0x68] sm:$0xff]  ;;  %v2110_v41 = vld [vmem:[#allocation14 + $0x80] sm:$0xff] }
 0x1d3   : > { %v3899_v42 = vcombine.high %v2103_v39, %v2107_v40 }
 0x1d5   : > { %4168 = vmatpush3.bf16.msra.mxu0 %v4445_v43  ;;  %4190 = vmatpush3.bf16.msra.mxu1 %v4446_v44  ;;  %v2114_v43 = vld [vmem:[#allocation14 + $0xa0] sm:$0xff]  ;;  %v2111_v44 = vld [vmem:[#allocation14 + $0x88] sm:$0xff] }
 0x1d6   : > { %4169 = vmatprep.subr.bf16.mxu0 %v4447_v45  ;;  %4191 = vmatprep.subr.bf16.mxu1 %v4448_v46  ;;  %v2115_v45 = vld [vmem:[#allocation14 + $0xa8] sm:$0xff]  ;;  %v3896_v46 = vcombine.low %v2102_v32, %v2106_v33  ;;  %v2134_v33 = vld [vmem:[#allocation14 + $0x140] sm:$0xff] }
 0x1d7   : > { %v3906_v58 = vcombine.low %v2111_v44, %v2115_v45 }
 0x1d9   : > { %4170 = vmatpush3.bf16.msra.mxu0 %v4449_v48  ;;  %4192 = vmatpush3.bf16.msra.mxu1 %v4450_v49  ;;  %v3898_v48 = vcombine.low %v2103_v39, %v2107_v40  ;;  %v3905_v49 = vcombine.high %v2110_v41, %v2114_v43  ;;  %v2139_v39 = vld [vmem:[#allocation14 + $0x168] sm:$0xff] }
 0x1da   : > { %4171 = vmatprep.subr.bf16.mxu0 %v4451_v51  ;;  %4193 = vmatprep.subr.bf16.mxu1 %v4452_v52  ;;  %v3907_v51 = vcombine.high %v2111_v44, %v2115_v45  ;;  %v2118_v52 = vld [vmem:[#allocation14 + $0xc0] sm:$0xff]  ;;  %v2143_v45 = vld [vmem:[#allocation14 + $0x188] sm:$0xff] }
 0x1db   : > { %v3913_v10 = vcombine.high %v2118_v52, %v2122_v53  ;;  %v3912_v3 = vcombine.low %v2118_v52, %v2122_v53  ;;  %v2146_v44 = vld [vmem:[#allocation14 + $0x1a0] sm:$0xff] }
 0x1dc   : > { %v2154_v52 = vld [vmem:[#allocation14 + $0x1e0] sm:$0xff] }
 0x1dd   : > { %4172 = vmatpush3.bf16.msra.mxu0 %v4453_v56  ;;  %4194 = vmatpush3.bf16.msra.mxu1 %v4454_v57  ;;  %v2123_v56 = vld [vmem:[#allocation14 + $0xe8] sm:$0xff]  ;;  %v3904_v57 = vcombine.low %v2110_v41, %v2114_v43  ;;  %v2142_v43 = vld [vmem:[#allocation14 + $0x180] sm:$0xff] }
 0x1de   : > { %4173 = vmatprep.subr.bf16.mxu0 %v4455_v61  ;;  %4195 = vmatprep.subr.bf16.mxu1 %v4456_v2  ;;  %v3915_v60 = vcombine.high %v2119_v54, %v2123_v56  ;;  %v2126_v61 = vld [vmem:[#allocation14 + $0x100] sm:$0xff]  ;;  %v3914_v13 = vcombine.low %v2119_v54, %v2123_v56 }
 0x1df   : > { %v2130_v2 = vld [vmem:[#allocation14 + $0x120] sm:$0xff] }
 0x1e0   : > { %v3921_v16 = vcombine.high %v2126_v61, %v2130_v2  ;;  %v3920_v20 = vcombine.low %v2126_v61, %v2130_v2  ;;  %v5522_v61 = vld [vmem:[#allocation14 + $0x30] sm:$0xff]  ;;  %v5524_v2 = vld [vmem:[#allocation14 + $0x18] sm:$0xff] }
 0x1e1   : > { %4174 = vmatpush3.bf16.msra.mxu0 %v4457_v21  ;;  %4196 = vmatpush3.bf16.msra.mxu1 %v4458_v22  ;;  %v3922_v22 = vcombine.low %v2127_v6, %v2131_v59  ;;  %v5526_v6 = vld [vmem:[#allocation14 + $0x38] sm:$0xff] }
 0x1e2   : > { %2478 = vmatprep.subr.bf16.mxu0 %v3889_v30  ;;  %2521 = vmatprep.subr.bf16.mxu1 %v3891_v37  ;;  %v2135_v37 = vld [vmem:[#allocation14 + $0x148] sm:$0xff] }
 0x1e3   : > { %v3930_v41 = vcombine.low %v2135_v37, %v2139_v39 }
 0x1e4   : > { %2038 = vmatmul.mubr.bf16.vlgmr.msra.gmra.mrb[12].mxu0 %v683_v25  ;;  %2079 = vmatmul.mubr.bf16.vlgmr.msra.gmra.mrb[12].mxu1 %v685_v26 }
 0x1e5   : > { %2510 = vmatprep.mubr.bf16.mxu0 %v4904_v1  ;;  %2553 = vmatprep.mubr.bf16.mxu1 %v4904_v1 }
 0x1e6   : > { %2479 = vmatpush1.bf16.msra.mxu0 %v3888_v28  ;;  %2522 = vmatpush1.bf16.msra.mxu1 %v3890_v34  ;;  %v2138_v34 = vld [vmem:[#allocation14 + $0x160] sm:$0xff] }
 0x1e7   : > { %2480 = vmatprep.subr.bf16.mxu0 %v3897_v38  ;;  %2523 = vmatprep.subr.bf16.mxu1 %v3899_v42  ;;  %v3929_v38 = vcombine.high %v2134_v33, %v2138_v34  ;;  %v3928_v40 = vcombine.low %v2134_v33, %v2138_v34  ;;  %v3931_v42 = vcombine.high %v2135_v37, %v2139_v39 }
 0x1ea   : > { %2481 = vmatpush1.bf16.msra.mxu0 %v3896_v46  ;;  %2524 = vmatpush1.bf16.msra.mxu1 %v3898_v48  ;;  %v3936_v46 = vcombine.low %v2142_v43, %v2146_v44  ;;  %v3937_v48 = vcombine.high %v2142_v43, %v2146_v44 }
 0x1eb   : > { %2482 = vmatprep.subr.bf16.mxu0 %v3905_v49  ;;  %2525 = vmatprep.subr.bf16.mxu1 %v3907_v51  ;;  %v2147_v49 = vld [vmem:[#allocation14 + $0x1a8] sm:$0xff]  ;;  %v2150_v51 = vld [vmem:[#allocation14 + $0x1c0] sm:$0xff] }
 0x1ec   : > { %v3938_v53 = vcombine.low %v2143_v45, %v2147_v49  ;;  %v3939_v54 = vcombine.high %v2143_v45, %v2147_v49  ;;  %v3945_v56 = vcombine.high %v2150_v51, %v2154_v52 }
 0x1ee   : > { %2483 = vmatpush1.bf16.msra.mxu0 %v3904_v57  ;;  %2526 = vmatpush1.bf16.msra.mxu1 %v3906_v58  ;;  %v2151_v57 = vld [vmem:[#allocation14 + $0x1c8] sm:$0xff] }
 0x1ef   : > { %2484 = vmatprep.subr.bf16.mxu0 %v3913_v10  ;;  %2527 = vmatprep.subr.bf16.mxu1 %v3915_v60  ;;  %v2155_v58 = vld [vmem:[#allocation14 + $0x1e8] sm:$0xff]  ;;  %v5520_v10 = vld [vmem:[#allocation14 + $0x10] sm:$0xff] }
 0x1f0   : > { %v3947_v60 = vcombine.high %v2151_v57, %v2155_v58  ;;  %v3892_v59 = vcombine.low %v5520_v10, %v5522_v61 }
 0x1f2   : > { %2485 = vmatpush1.bf16.msra.mxu0 %v3912_v3  ;;  %2528 = vmatpush1.bf16.msra.mxu1 %v3914_v13  ;;  %v3894_v3 = vcombine.low %v5524_v2, %v5526_v6  ;;  %v3944_v13 = vcombine.low %v2150_v51, %v2154_v52 }
 0x1f3   : > { %2486 = vmatprep.subr.bf16.mxu0 %v3921_v16  ;;  %2529 = vmatprep.subr.bf16.mxu1 %v3923_v18  ;;  %v3946_v16 = vcombine.low %v2151_v57, %v2155_v58  ;;  %v3893_v18 = vcombine.high %v5520_v10, %v5522_v61 }
 0x1f6   : > { %2487 = vmatpush1.bf16.msra.mxu0 %v3920_v20  ;;  %2530 = vmatpush1.bf16.msra.mxu1 %v3922_v22  ;;  %v3895_v20 = vcombine.high %v5524_v2, %v5526_v6 }
 0x1f7   : > { %2488 = vmatprep.subr.bf16.mxu0 %v3929_v38  ;;  %2531 = vmatprep.subr.bf16.mxu1 %v3931_v42 }
 0x1fa   : > { %2489 = vmatpush1.bf16.msra.mxu0 %v3928_v40  ;;  %2532 = vmatpush1.bf16.msra.mxu1 %v3930_v41 }
 0x1fb   : > { %2490 = vmatprep.subr.bf16.mxu0 %v3937_v48  ;;  %2533 = vmatprep.subr.bf16.mxu1 %v3939_v54 }
 0x1fe   : > { %2491 = vmatpush1.bf16.msra.mxu0 %v3936_v46  ;;  %2534 = vmatpush1.bf16.msra.mxu1 %v3938_v53 }
 0x1ff   : > { %2492 = vmatprep.subr.bf16.mxu0 %v3945_v56  ;;  %2535 = vmatprep.subr.bf16.mxu1 %v3947_v60 }
 0x202   : > { %2493 = vmatpush1.bf16.msra.mxu0 %v3944_v13  ;;  %2536 = vmatpush1.bf16.msra.mxu1 %v3946_v16 }
 0x203   : > { %2564 = vmatprep.subr.bf16.mxu0 %v3893_v18  ;;  %2607 = vmatprep.subr.bf16.mxu1 %v3895_v20 }
 0x22d   : > { %v4043_v21 = vpop.f32.mrb[0].mxu0 }
 0x22e   : > { %v4044_v23 = vpop.f32.mrb[1].mxu0  ;;  %v4065_v35 = vpop.f32.mrb[0].mxu1 }
 0x22f   : > { %v4045_v36 = vadd.f32 %v4044_v23, %v4043_v21  ;;  %v4046_v24 = vpop.f32.mrb[2].mxu0  ;;  %v4066_v26 = vpop.f32.mrb[1].mxu1 }
 0x230   : > { %v4047_v25 = vpop.f32.mrb[3].mxu0  ;;  %v4067_v12 = vadd.f32 %v4066_v26, %v4065_v35  ;;  %v4068_v27 = vpop.f32.mrb[2].mxu1 }
 0x231   : > { %v4048_v11 = vadd.f32 %v4047_v25, %v4046_v24  ;;  %v4069_v28 = vpop.f32.mrb[3].mxu1 }
 0x232   : > { %v1451_v30 = vadd.f32 %v4067_v12, %v4045_v36  ;;  %v4070_v31 = vadd.f32 %v4069_v28, %v4068_v27 }
 0x234   : > { %v1454_v32 = vadd.f32 %v4070_v31, %v4048_v11 }
 0x24d   : > { %v4087_v21 = vpop.f32.mrb[4].mxu0 }
 0x24e   : > { %v4088_v22 = vpop.f32.mrb[5].mxu0  ;;  %v4109_v24 = vpop.f32.mrb[4].mxu1 }
 0x24f   : > { %v4089_v23 = vadd.f32 %v4088_v22, %v4087_v21  ;;  %v4090_v36 = vpop.f32.mrb[6].mxu0  ;;  %v4110_v25 = vpop.f32.mrb[5].mxu1 }
 0x250   : > { %v4091_v35 = vpop.f32.mrb[7].mxu0  ;;  %v4111_v12 = vadd.f32 %v4110_v25, %v4109_v24  ;;  %v4112_v27 = vpop.f32.mrb[6].mxu1  ;;  %v2087_v24 = vld [vmem:[%s5369_s27] sm:$0xff] }
 0x251   : > { %v1492_v26 = vadd.f32 %v4089_v23, %v1451_v30  ;;  %v4092_v11 = vadd.f32 %v4091_v35, %v4090_v36  ;;  %v4113_v28 = vpop.f32.mrb[7].mxu1 }
 0x252   : > { %v4114_v34 = vadd.f32 %v4113_v28, %v4112_v27  ;;  %v2104_v28 = vld [vmem:[#allocation14 + $0x50] sm:$0xff] }
 0x253   : > { %v1495_v31 = vadd.f32 %v4092_v11, %v1454_v32  ;;  %v1533_v33 = vadd.f32 %v4111_v12, %v1492_v26  ;;  %v2088_v26 = vld [vmem:[%s5369_s27 + $0x8] sm:$0xff] }
 0x255   : > { %v1536_v37 = vadd.f32 %v4114_v34, %v1495_v31  ;;  %v2108_v31 = vld [vmem:[#allocation14 + $0x70] sm:$0xff]  ;;  %v2109_v34 = vld [vmem:[#allocation14 + $0x78] sm:$0xff] }
 0x297   : > { %v4131_v38 = vpop.f32.mrb[8].mxu0  ;;  %v4153_v39 = vpop.f32.mrb[8].mxu1 }
 0x298   : > { %v4132_v40 = vpop.f32.mrb[9].mxu0  ;;  %v4154_v41 = vpop.f32.mrb[9].mxu1 }
 0x299   : > { %v4133_v42 = vadd.f32 %v4132_v40, %v4131_v38  ;;  %v4155_v43 = vadd.f32 %v4154_v41, %v4153_v39  ;;  %v4134_v44 = vpop.f32.mrb[10].mxu0  ;;  %v4156_v45 = vpop.f32.mrb[10].mxu1  ;;  %v3901_v40 = vcombine.high %v2104_v28, %v2108_v31 }
 0x29a   : > { %v4135_v46 = vpop.f32.mrb[11].mxu0  ;;  %v4157_v48 = vpop.f32.mrb[11].mxu1 }
 0x29b   : > { %v1958_v49 = vadd.f32 %v4133_v42, %v1533_v33  ;;  %v4136_v30 = vadd.f32 %v4135_v46, %v4134_v44  ;;  %v4158_v51 = vadd.f32 %v4157_v48, %v4156_v45  ;;  %v2105_v33 = vld [vmem:[#allocation14 + $0x58] sm:$0xff]  ;;  %v2112_v42 = vld [vmem:[#allocation14 + $0x90] sm:$0xff]  ;;  %v3900_v46 = vcombine.low %v2104_v28, %v2108_v31 }
 0x29c   : > { %v3903_v41 = vcombine.high %v2105_v33, %v2109_v34  ;;  %v2113_v44 = vld [vmem:[#allocation14 + $0x98] sm:$0xff]  ;;  %v3902_v48 = vcombine.low %v2105_v33, %v2109_v34  ;;  %v2152_v33 = vld [vmem:[#allocation14 + $0x1d0] sm:$0xff] }
 0x29d   : > { %v1999_v52 = vadd.f32 %v4155_v43, %v1958_v49  ;;  %v1961_v53 = vadd.f32 %v4136_v30, %v1536_v37  ;;  %v2116_v43 = vld [vmem:[#allocation14 + $0xb0] sm:$0xff]  ;;  %v2117_v45 = vld [vmem:[#allocation14 + $0xb8] sm:$0xff] }
 0x29e   : > { %v3909_v49 = vcombine.high %v2112_v42, %v2116_v43  ;;  %v3911_v30 = vcombine.high %v2113_v44, %v2117_v45  ;;  %v3908_v10 = vcombine.low %v2112_v42, %v2116_v43  ;;  %v3910_v61 = vcombine.low %v2113_v44, %v2117_v45  ;;  %v2156_v34 = vld [vmem:[#allocation14 + $0x1f0] sm:$0xff]  ;;  %v2650_v44 = vld [vmem:[#allocation16] sm:$0xff] }
 0x29f   : > { %v2002_v32 = vadd.f32 %v4158_v51, %v1961_v53  ;;  %v2120_v51 = vld [vmem:[#allocation14 + $0xd0] sm:$0xff]  ;;  %v2121_v53 = vld [vmem:[#allocation14 + $0xd8] sm:$0xff]  ;;  %v3949_v42 = vcombine.high %v2152_v33, %v2156_v34  ;;  %v2654_v45 = vld [vmem:[#allocation16 + $0x20] sm:$0xff] }
 0x2b7   : > { %v4175_v54 = vpop.f32.mrb[12].mxu0  ;;  %v4197_v56 = vpop.f32.mrb[12].mxu1 }
 0x2b8   : > { %v4176_v57 = vpop.f32.mrb[13].mxu0  ;;  %v4198_v58 = vpop.f32.mrb[13].mxu1 }
 0x2b9   : > { %v4177_v60 = vadd.f32 %v4176_v57, %v4175_v54  ;;  %v4199_v13 = vadd.f32 %v4198_v58, %v4197_v56  ;;  %v4178_v16 = vpop.f32.mrb[14].mxu0  ;;  %v4200_v18 = vpop.f32.mrb[14].mxu1  ;;  %v2129_v54 = vld [vmem:[#allocation14 + $0x118] sm:$0xff] }
 0x2ba   : > { %v4179_v20 = vpop.f32.mrb[15].mxu0  ;;  %v4201_v21 = vpop.f32.mrb[15].mxu1  ;;  %v2133_v56 = vld [vmem:[#allocation14 + $0x138] sm:$0xff] }
 0x2bb   : > { %v2040_v22 = vadd.f32 %v4177_v60, %v1999_v52  ;;  %v4180_v23 = vadd.f32 %v4179_v20, %v4178_v16  ;;  %v4202_v36 = vadd.f32 %v4201_v21, %v4200_v18  ;;  %v2124_v52 = vld [vmem:[#allocation14 + $0xf0] sm:$0xff]  ;;  %v2137_v20 = vld [vmem:[#allocation14 + $0x158] sm:$0xff] }
 0x2bc   : > { %v3917_v2 = vcombine.high %v2120_v51, %v2124_v52  ;;  %v3916_v57 = vcombine.low %v2120_v51, %v2124_v52  ;;  %v2136_v16 = vld [vmem:[#allocation14 + $0x150] sm:$0xff]  ;;  %v2141_v21 = vld [vmem:[#allocation14 + $0x178] sm:$0xff]  ;;  %v3953_v51 = vcombine.high %v2650_v44, %v2654_v45 }
 0x2bd   : > { %v2081_v35 = vadd.f32 %v4199_v13, %v2040_v22  ;;  %v2043_v25 = vadd.f32 %v4180_v23, %v2002_v32  ;;  %v2125_v32 = vld [vmem:[#allocation14 + $0xf8] sm:$0xff]  ;;  %v3927_v13 = vcombine.high %v2129_v54, %v2133_v56  ;;  %v2140_v18 = vld [vmem:[#allocation14 + $0x170] sm:$0xff]  ;;  %v3926_v23 = vcombine.low %v2129_v54, %v2133_v56  ;;  %v2666_v54 = vld [vmem:[#allocation16 + $0x80] sm:$0xff] }
 0x2be   : > { %v3919_v6 = vcombine.high %v2121_v53, %v2125_v32  ;;  %v3918_v58 = vcombine.low %v2121_v53, %v2125_v32  ;;  %v2658_v53 = vld [vmem:[#allocation16 + $0x40] sm:$0xff] }
 0x2bf   : > { %v2089_v11 = vadd.f32 %v2087_v24, %v2081_v35  ;;  %v2084_v12 = vadd.f32 %v4202_v36, %v2043_v25  ;;  %v3933_v36 = vcombine.high %v2136_v16, %v2140_v18  ;;  %v3935_v24 = vcombine.high %v2137_v20, %v2141_v21  ;;  %v2144_v35 = vld [vmem:[#allocation14 + $0x190] sm:$0xff]  ;;  %v2662_v32 = vld [vmem:[#allocation16 + $0x60] sm:$0xff] }
 0x2c0   : > { %v2148_v25 = vld [vmem:[#allocation14 + $0x1b0] sm:$0xff]  ;;  %v2670_v56 = vld [vmem:[#allocation16 + $0xa0] sm:$0xff] }
 0x2c1   : > { %v2090_v27 = vadd.f32 %v2088_v26, %v2084_v12  ;;  %v2091_v37 = vmax.f32 %v2089_v11, 0.0  ;;  %v2145_v26 = vld [vmem:[#allocation14 + $0x198] sm:$0xff]  ;;  %v3932_v12 = vcombine.low %v2136_v16, %v2140_v18  ;;  %v3941_v28 = vcombine.high %v2144_v35, %v2148_v25 }
 0x2c2   : > { %v2149_v11 = vld [vmem:[#allocation14 + $0x1b8] sm:$0xff]  ;;  %v3969_v16 = vcombine.high %v2666_v54, %v2670_v56 }
 0x2c3   : > { %v2092_v38 = vmax.f32 %v2090_v27, 0.0  ;;  %v3934_v27 = vcombine.low %v2137_v20, %v2141_v21  ;;  %v3943_v31 = vcombine.high %v2145_v26, %v2149_v11  ;;  %v2674_v20 = vld [vmem:[#allocation16 + $0xc0] sm:$0xff] }
 0x2c4   : > { %v2678_v21 = vld [vmem:[#allocation16 + $0xe0] sm:$0xff] }
 0x2c5   : > { %v5538_v39 = vpack.c.bf16 %v2092_v38, %v2091_v37  ;;  %v2153_v37 = vld [vmem:[#allocation14 + $0x1d8] sm:$0xff] }
 0x2c6   : > { %v2157_v38 = vld [vmem:[#allocation14 + $0x1f8] sm:$0xff] }
 0x2c7   : > { %2511 = vmatmul.mubr.bf16.vlgmr.msra.gmra.mrb[16].mxu0 %v5538_v39  ;;  %2554 = vmatmul.mubr.bf16.vlgmr.msra.gmra.mrb[16].mxu1 %v5538_v39  ;;  %v3951_v43 = vcombine.high %v2153_v37, %v2157_v38 }
 0x2c8   : > { %2565 = vmatpush1.bf16.msra.mxu0 %v3892_v59  ;;  %2608 = vmatpush1.bf16.msra.mxu1 %v3894_v3  ;;  %v2128_v59 = vld [vmem:[#allocation14 + $0x110] sm:$0xff] }
 0x2c9   : > { %2566 = vmatprep.subr.bf16.mxu0 %v3901_v40  ;;  %2609 = vmatprep.subr.bf16.mxu1 %v3903_v41  ;;  %v2132_v3 = vld [vmem:[#allocation14 + $0x130] sm:$0xff]  ;;  %v3940_v40 = vcombine.low %v2144_v35, %v2148_v25  ;;  %v3942_v41 = vcombine.low %v2145_v26, %v2149_v11  ;;  %v3977_v35 = vcombine.high %v2674_v20, %v2678_v21  ;;  %v2682_v26 = vld [vmem:[#allocation16 + $0x100] sm:$0xff] }
 0x2ca   : > { %2596 = vmatprep.mubr.bf16.mxu0 %v4904_v1  ;;  %2639 = vmatprep.mubr.bf16.mxu1 %v4904_v1  ;;  %v3925_v60 = vcombine.high %v2128_v59, %v2132_v3  ;;  %v3924_v22 = vcombine.low %v2128_v59, %v2132_v3  ;;  %v3961_v59 = vcombine.high %v2658_v53, %v2662_v32  ;;  %v2686_v11 = vld [vmem:[#allocation16 + $0x120] sm:$0xff] }
 0x2cc   : > { %2567 = vmatpush1.bf16.msra.mxu0 %v3900_v46  ;;  %2610 = vmatpush1.bf16.msra.mxu1 %v3902_v48  ;;  %v2651_v46 = vld [vmem:[#allocation16 + $0x8] sm:$0xff] }
 0x2cd   : > { %2568 = vmatprep.subr.bf16.mxu0 %v3909_v49  ;;  %2611 = vmatprep.subr.bf16.mxu1 %v3911_v30  ;;  %v2655_v48 = vld [vmem:[#allocation16 + $0x28] sm:$0xff]  ;;  %v3948_v49 = vcombine.low %v2152_v33, %v2156_v34  ;;  %v3950_v30 = vcombine.low %v2153_v37, %v2157_v38  ;;  %v3985_v33 = vcombine.high %v2682_v26, %v2686_v11  ;;  %v2690_v37 = vld [vmem:[#allocation16 + $0x140] sm:$0xff] }
 0x2ce   : > { %v3955_v52 = vcombine.high %v2651_v46, %v2655_v48  ;;  %v2694_v38 = vld [vmem:[#allocation16 + $0x160] sm:$0xff] }
 0x2d0   : > { %2569 = vmatpush1.bf16.msra.mxu0 %v3908_v10  ;;  %2612 = vmatpush1.bf16.msra.mxu1 %v3910_v61  ;;  %v2659_v10 = vld [vmem:[#allocation16 + $0x48] sm:$0xff] }
 0x2d1   : > { %2570 = vmatprep.subr.bf16.mxu0 %v3917_v2  ;;  %2613 = vmatprep.subr.bf16.mxu1 %v3919_v6  ;;  %v2663_v61 = vld [vmem:[#allocation16 + $0x68] sm:$0xff]  ;;  %v3952_v2 = vcombine.low %v2650_v44, %v2654_v45  ;;  %v3954_v6 = vcombine.low %v2651_v46, %v2655_v48  ;;  %v3993_v44 = vcombine.high %v2690_v37, %v2694_v38  ;;  %v2698_v46 = vld [vmem:[#allocation16 + $0x180] sm:$0xff] }
 0x2d2   : > { %v3963_v3 = vcombine.high %v2659_v10, %v2663_v61  ;;  %v2702_v48 = vld [vmem:[#allocation16 + $0x1a0] sm:$0xff] }
 0x2d4   : > { %2571 = vmatpush1.bf16.msra.mxu0 %v3916_v57  ;;  %2614 = vmatpush1.bf16.msra.mxu1 %v3918_v58  ;;  %v2667_v57 = vld [vmem:[#allocation16 + $0x88] sm:$0xff] }
 0x2d5   : > { %2572 = vmatprep.subr.bf16.mxu0 %v3925_v60  ;;  %2615 = vmatprep.subr.bf16.mxu1 %v3927_v13  ;;  %v2671_v58 = vld [vmem:[#allocation16 + $0xa8] sm:$0xff]  ;;  %v3960_v60 = vcombine.low %v2658_v53, %v2662_v32  ;;  %v3962_v13 = vcombine.low %v2659_v10, %v2663_v61  ;;  %v4001_v53 = vcombine.high %v2698_v46, %v2702_v48  ;;  %v2706_v10 = vld [vmem:[#allocation16 + $0x1c0] sm:$0xff] }
 0x2d6   : > { %v3971_v18 = vcombine.high %v2667_v57, %v2671_v58  ;;  %v2710_v61 = vld [vmem:[#allocation16 + $0x1e0] sm:$0xff] }
 0x2d8   : > { %2573 = vmatpush1.bf16.msra.mxu0 %v3924_v22  ;;  %2616 = vmatpush1.bf16.msra.mxu1 %v3926_v23  ;;  %v2675_v22 = vld [vmem:[#allocation16 + $0xc8] sm:$0xff] }
 0x2d9   : > { %2574 = vmatprep.subr.bf16.mxu0 %v3933_v36  ;;  %2617 = vmatprep.subr.bf16.mxu1 %v3935_v24  ;;  %v2679_v23 = vld [vmem:[#allocation16 + $0xe8] sm:$0xff]  ;;  %v3968_v36 = vcombine.low %v2666_v54, %v2670_v56  ;;  %v3970_v24 = vcombine.low %v2667_v57, %v2671_v58  ;;  %v4009_v54 = vcombine.high %v2706_v10, %v2710_v61  ;;  %v2652_v57 = vld [vmem:[#allocation16 + $0x10] sm:$0xff] }
 0x2da   : > { %v3979_v25 = vcombine.high %v2675_v22, %v2679_v23  ;;  %v2656_v58 = vld [vmem:[#allocation16 + $0x30] sm:$0xff] }
 0x2dc   : > { %2575 = vmatpush1.bf16.msra.mxu0 %v3932_v12  ;;  %2618 = vmatpush1.bf16.msra.mxu1 %v3934_v27  ;;  %v2683_v12 = vld [vmem:[#allocation16 + $0x108] sm:$0xff] }
 0x2dd   : > { %2576 = vmatprep.subr.bf16.mxu0 %v3941_v28  ;;  %2619 = vmatprep.subr.bf16.mxu1 %v3943_v31  ;;  %v2687_v27 = vld [vmem:[#allocation16 + $0x128] sm:$0xff]  ;;  %v3976_v28 = vcombine.low %v2674_v20, %v2678_v21  ;;  %v3978_v31 = vcombine.low %v2675_v22, %v2679_v23  ;;  %v3957_v20 = vcombine.high %v2652_v57, %v2656_v58  ;;  %v2660_v22 = vld [vmem:[#allocation16 + $0x50] sm:$0xff] }
 0x2de   : > { %v3987_v34 = vcombine.high %v2683_v12, %v2687_v27  ;;  %v2664_v23 = vld [vmem:[#allocation16 + $0x70] sm:$0xff] }
 0x2e0   : > { %2577 = vmatpush1.bf16.msra.mxu0 %v3940_v40  ;;  %2620 = vmatpush1.bf16.msra.mxu1 %v3942_v41  ;;  %v2691_v40 = vld [vmem:[#allocation16 + $0x148] sm:$0xff] }
 0x2e1   : > { %2578 = vmatprep.subr.bf16.mxu0 %v3949_v42  ;;  %2621 = vmatprep.subr.bf16.mxu1 %v3951_v43  ;;  %v2695_v41 = vld [vmem:[#allocation16 + $0x168] sm:$0xff]  ;;  %v3984_v42 = vcombine.low %v2682_v26, %v2686_v11  ;;  %v3986_v43 = vcombine.low %v2683_v12, %v2687_v27  ;;  %v3965_v26 = vcombine.high %v2660_v22, %v2664_v23  ;;  %v2668_v12 = vld [vmem:[#allocation16 + $0x90] sm:$0xff] }
 0x2e2   : > { %v3995_v45 = vcombine.high %v2691_v40, %v2695_v41  ;;  %v2672_v27 = vld [vmem:[#allocation16 + $0xb0] sm:$0xff] }
 0x2e4   : > { %2579 = vmatpush1.bf16.msra.mxu0 %v3948_v49  ;;  %2622 = vmatpush1.bf16.msra.mxu1 %v3950_v30  ;;  %v2699_v49 = vld [vmem:[#allocation16 + $0x188] sm:$0xff] }
 0x2e5   : > { %3034 = vmatprep.subr.bf16.mxu0 %v3953_v51  ;;  %3077 = vmatprep.subr.bf16.mxu1 %v3955_v52  ;;  %v2703_v30 = vld [vmem:[#allocation16 + $0x1a8] sm:$0xff]  ;;  %v3992_v51 = vcombine.low %v2690_v37, %v2694_v38  ;;  %v3994_v52 = vcombine.low %v2691_v40, %v2695_v41  ;;  %v3973_v37 = vcombine.high %v2668_v12, %v2672_v27  ;;  %v2676_v40 = vld [vmem:[#allocation16 + $0xd0] sm:$0xff] }
 0x2e6   : > { %v4003_v32 = vcombine.high %v2699_v49, %v2703_v30  ;;  %v2680_v41 = vld [vmem:[#allocation16 + $0xf0] sm:$0xff] }
 0x2e7   : > { %2597 = vmatmul.mubr.bf16.vlgmr.msra.gmra.mrb[20].mxu0 %v5538_v39  ;;  %2640 = vmatmul.mubr.bf16.vlgmr.msra.gmra.mrb[20].mxu1 %v5538_v39 }
 0x2e8   : > { %3035 = vmatpush1.bf16.msra.mxu0 %v3952_v2  ;;  %3078 = vmatpush1.bf16.msra.mxu1 %v3954_v6  ;;  %v2707_v2 = vld [vmem:[#allocation16 + $0x1c8] sm:$0xff] }
 0x2e9   : > { %3036 = vmatprep.subr.bf16.mxu0 %v3961_v59  ;;  %3079 = vmatprep.subr.bf16.mxu1 %v3963_v3  ;;  %v2711_v6 = vld [vmem:[#allocation16 + $0x1e8] sm:$0xff]  ;;  %v4000_v59 = vcombine.low %v2698_v46, %v2702_v48  ;;  %v4002_v3 = vcombine.low %v2699_v49, %v2703_v30  ;;  %v3981_v46 = vcombine.high %v2676_v40, %v2680_v41  ;;  %v2684_v49 = vld [vmem:[#allocation16 + $0x110] sm:$0xff] }
 0x2ea   : > { %3066 = vmatprep.mubr.bf16.mxu0 %v4904_v1  ;;  %3109 = vmatprep.mubr.bf16.mxu1 %v4904_v1  ;;  %v4011_v56 = vcombine.high %v2707_v2, %v2711_v6  ;;  %v2688_v30 = vld [vmem:[#allocation16 + $0x130] sm:$0xff] }
 0x2ec   : > { %3037 = vmatpush1.bf16.msra.mxu0 %v3960_v60  ;;  %3080 = vmatpush1.bf16.msra.mxu1 %v3962_v13  ;;  %v2653_v60 = vld [vmem:[#allocation16 + $0x18] sm:$0xff] }
 0x2ed   : > { %3038 = vmatprep.subr.bf16.mxu0 %v3969_v16  ;;  %3081 = vmatprep.subr.bf16.mxu1 %v3971_v18  ;;  %v2657_v13 = vld [vmem:[#allocation16 + $0x38] sm:$0xff]  ;;  %v4008_v16 = vcombine.low %v2706_v10, %v2710_v61  ;;  %v4010_v18 = vcombine.low %v2707_v2, %v2711_v6  ;;  %v3989_v10 = vcombine.high %v2684_v49, %v2688_v30  ;;  %v2692_v61 = vld [vmem:[#allocation16 + $0x150] sm:$0xff] }
 0x2ee   : > { %v3959_v21 = vcombine.high %v2653_v60, %v2657_v13  ;;  %v2696_v2 = vld [vmem:[#allocation16 + $0x170] sm:$0xff]  ;;  %v2693_v6 = vld [vmem:[#allocation16 + $0x158] sm:$0xff] }
 0x2f0   : > { %3039 = vmatpush1.bf16.msra.mxu0 %v3968_v36  ;;  %3082 = vmatpush1.bf16.msra.mxu1 %v3970_v24  ;;  %v2661_v36 = vld [vmem:[#allocation16 + $0x58] sm:$0xff] }
 0x2f1   : > { %3040 = vmatprep.subr.bf16.mxu0 %v3977_v35  ;;  %3083 = vmatprep.subr.bf16.mxu1 %v3979_v25  ;;  %v2665_v24 = vld [vmem:[#allocation16 + $0x78] sm:$0xff]  ;;  %v3956_v35 = vcombine.low %v2652_v57, %v2656_v58  ;;  %v3958_v25 = vcombine.low %v2653_v60, %v2657_v13  ;;  %v2700_v58 = vld [vmem:[#allocation16 + $0x190] sm:$0xff] }
 0x2f2   : > { %v3967_v11 = vcombine.high %v2661_v36, %v2665_v24  ;;  %v2704_v60 = vld [vmem:[#allocation16 + $0x1b0] sm:$0xff]  ;;  %v2701_v13 = vld [vmem:[#allocation16 + $0x198] sm:$0xff] }
 0x2f4   : > { %3041 = vmatpush1.bf16.msra.mxu0 %v3976_v28  ;;  %3084 = vmatpush1.bf16.msra.mxu1 %v3978_v31  ;;  %v2669_v28 = vld [vmem:[#allocation16 + $0x98] sm:$0xff] }
 0x2f5   : > { %3042 = vmatprep.subr.bf16.mxu0 %v3985_v33  ;;  %3085 = vmatprep.subr.bf16.mxu1 %v3987_v34  ;;  %v2673_v31 = vld [vmem:[#allocation16 + $0xb8] sm:$0xff]  ;;  %v3964_v33 = vcombine.low %v2660_v22, %v2664_v23  ;;  %v3966_v34 = vcombine.low %v2661_v36, %v2665_v24  ;;  %v2708_v23 = vld [vmem:[#allocation16 + $0x1d0] sm:$0xff] }
 0x2f6   : > { %v3975_v38 = vcombine.high %v2669_v28, %v2673_v31  ;;  %v2712_v36 = vld [vmem:[#allocation16 + $0x1f0] sm:$0xff]  ;;  %v2709_v24 = vld [vmem:[#allocation16 + $0x1d8] sm:$0xff] }
 0x2f8   : > { %3043 = vmatpush1.bf16.msra.mxu0 %v3984_v42  ;;  %3086 = vmatpush1.bf16.msra.mxu1 %v3986_v43  ;;  %v2677_v42 = vld [vmem:[#allocation16 + $0xd8] sm:$0xff] }
 0x2f9   : > { %3044 = vmatprep.subr.bf16.mxu0 %v3993_v44  ;;  %3087 = vmatprep.subr.bf16.mxu1 %v3995_v45  ;;  %v2681_v43 = vld [vmem:[#allocation16 + $0xf8] sm:$0xff]  ;;  %v3972_v44 = vcombine.low %v2668_v12, %v2672_v27  ;;  %v3974_v45 = vcombine.low %v2669_v28, %v2673_v31  ;;  %v4012_v27 = vcombine.low %v2708_v23, %v2712_v36 }
 0x2fa   : > { %v3983_v48 = vcombine.high %v2677_v42, %v2681_v43  ;;  %v3397_v31 = vadd.f32 %v5417_v8, %v5415_v7 }
 0x2fc   : > { %3045 = vmatpush1.bf16.msra.mxu0 %v3992_v51  ;;  %3088 = vmatpush1.bf16.msra.mxu1 %v3994_v52  ;;  %v2685_v51 = vld [vmem:[#allocation16 + $0x118] sm:$0xff] }
 0x2fd   : > { %3046 = vmatprep.subr.bf16.mxu0 %v4001_v53  ;;  %3089 = vmatprep.subr.bf16.mxu1 %v4003_v32  ;;  %v2689_v52 = vld [vmem:[#allocation16 + $0x138] sm:$0xff]  ;;  %v3980_v53 = vcombine.low %v2676_v40, %v2680_v41  ;;  %v3982_v32 = vcombine.low %v2677_v42, %v2681_v43 }
 0x300   : > { %3047 = vmatpush1.bf16.msra.mxu0 %v4000_v59  ;;  %3090 = vmatpush1.bf16.msra.mxu1 %v4002_v3  ;;  %v2697_v59 = vld [vmem:[#allocation16 + $0x178] sm:$0xff]  ;;  %v3988_v3 = vcombine.low %v2684_v49, %v2688_v30 }
 0x301   : > { %3048 = vmatprep.subr.bf16.mxu0 %v4009_v54  ;;  %3091 = vmatprep.subr.bf16.mxu1 %v4011_v56  ;;  %v3990_v54 = vcombine.low %v2685_v51, %v2689_v52  ;;  %v3997_v56 = vcombine.high %v2692_v61, %v2696_v2  ;;  %v3999_v57 = vcombine.high %v2693_v6, %v2697_v59 }
 0x304   : > { %3049 = vmatpush1.bf16.msra.mxu0 %v4008_v16  ;;  %3092 = vmatpush1.bf16.msra.mxu1 %v4010_v18  ;;  %v2705_v16 = vld [vmem:[#allocation16 + $0x1b8] sm:$0xff]  ;;  %v3996_v18 = vcombine.low %v2692_v61, %v2696_v2  ;;  %v4526_v2 = vld [vmem:[%s5361_s26 + $0x40] sm:$0xff] }
 0x305   : > { %3120 = vmatprep.subr.bf16.mxu0 %v3957_v20  ;;  %3163 = vmatprep.subr.bf16.mxu1 %v3959_v21  ;;  %v3998_v20 = vcombine.low %v2693_v6, %v2697_v59  ;;  %v4005_v21 = vcombine.high %v2700_v58, %v2704_v60  ;;  %v4007_v22 = vcombine.high %v2701_v13, %v2705_v16 }
 0x307   : > { %3067 = vmatmul.mubr.bf16.vlgmr.msra.gmra.mrb[24].mxu0 %v5538_v39  ;;  %3110 = vmatmul.mubr.bf16.vlgmr.msra.gmra.mrb[24].mxu1 %v5538_v39 }
 0x308   : > { %3121 = vmatpush1.bf16.msra.mxu0 %v3956_v35  ;;  %3164 = vmatpush1.bf16.msra.mxu1 %v3958_v25  ;;  %v2713_v35 = vld [vmem:[#allocation16 + $0x1f8] sm:$0xff]  ;;  %v4004_v25 = vcombine.low %v2700_v58, %v2704_v60  ;;  %v4528_v58 = vld [vmem:[%s5361_s26 + $0x50] sm:$0xff] }
 0x309   : > { %3122 = vmatprep.subr.bf16.mxu0 %v3965_v26  ;;  %3165 = vmatprep.subr.bf16.mxu1 %v3967_v11  ;;  %v4006_v26 = vcombine.low %v2701_v13, %v2705_v16  ;;  %v4013_v11 = vcombine.high %v2708_v23, %v2712_v36  ;;  %v4015_v12 = vcombine.high %v2709_v24, %v2713_v35  ;;  %v4529_v13 = vld [vmem:[%s5361_s26 + $0x48] sm:$0xff] }
 0x30a   : > { %3152 = vmatprep.mubr.bf16.mxu0 %v4904_v1  ;;  %3195 = vmatprep.mubr.bf16.mxu1 %v4904_v1  ;;  %v3991_v1 = vcombine.high %v2685_v51, %v2689_v52  ;;  %v4014_v28 = vcombine.low %v2709_v24, %v2713_v35  ;;  %v4524_v51 = vld [vmem:[%s5361_s26 + $0x10] sm:$0xff]  ;;  %v4530_v24 = vld [vmem:[%s5361_s26 + $0x58] sm:$0xff] }
 0x30c   : > { %3123 = vmatpush1.bf16.msra.mxu0 %v3964_v33  ;;  %3166 = vmatpush1.bf16.msra.mxu1 %v3966_v34  ;;  %v3388_v33 = vadd.f32 %v5402_v63, %v5410_v4  ;;  %v3398_v34 = vadd.f32 %v3397_v31, %v5430_v14 }
 0x30d   : > { %3124 = vmatprep.subr.bf16.mxu0 %v3973_v37  ;;  %3167 = vmatprep.subr.bf16.mxu1 %v3975_v38 }
 0x30e   : > { %v3389_v37 = vadd.f32 %v3388_v33, %v5412_v5  ;;  %v3399_v38 = vadd.f32 %v3398_v34, %v5432_v15 }
 0x310   : > { %3125 = vmatpush1.bf16.msra.mxu0 %v3972_v44  ;;  %3168 = vmatpush1.bf16.msra.mxu1 %v3974_v45  ;;  %v3390_v40 = vadd.f32 %v3389_v37, %v5404_v0  ;;  %v3400_v41 = vadd.f32 %v3399_v38, %v5491_v47  ;;  %v4523_v44 = vld [vmem:[%s5361_s26] sm:$0xff] }
 0x311   : > { %3126 = vmatprep.subr.bf16.mxu0 %v3981_v46  ;;  %3169 = vmatprep.subr.bf16.mxu1 %v3983_v48 }
 0x312   : > { %v3401_v49 = vadd.f32 %v3400_v41, %v5436_v17  ;;  %v4531_v41 = vld [vmem:[%s5361_s26 + $0x20] sm:$0xff] }
 0x314   : > { %3127 = vmatpush1.bf16.msra.mxu0 %v3980_v53  ;;  %3170 = vmatpush1.bf16.msra.mxu1 %v3982_v32  ;;  %v4525_v53 = vld [vmem:[%s5361_s26 + $0x8] sm:$0xff] }
 0x315   : > { %3128 = vmatprep.subr.bf16.mxu0 %v3989_v10  ;;  %3171 = vmatprep.subr.bf16.mxu1 %v3991_v1 }
 0x318   : > { %3129 = vmatpush1.bf16.msra.mxu0 %v3988_v3  ;;  %3172 = vmatpush1.bf16.msra.mxu1 %v3990_v54 }
 0x319   : > { %3130 = vmatprep.subr.bf16.mxu0 %v3997_v56  ;;  %3173 = vmatprep.subr.bf16.mxu1 %v3999_v57  ;;  %v4527_v56 = vld [vmem:[%s5361_s26 + $0x18] sm:$0xff] }
 0x31c   : > { %3131 = vmatpush1.bf16.msra.mxu0 %v3996_v18  ;;  %3174 = vmatpush1.bf16.msra.mxu1 %v3998_v20  ;;  %v3402_v20 = vadd.f32 %v3401_v49, %v5494_v50 }
 0x31d   : > { %3132 = vmatprep.subr.bf16.mxu0 %v4005_v21  ;;  %3175 = vmatprep.subr.bf16.mxu1 %v4007_v22 }
 0x320   : > { %3133 = vmatpush1.bf16.msra.mxu0 %v4004_v25  ;;  %3176 = vmatpush1.bf16.msra.mxu1 %v4006_v26  ;;  %v3403_v25 = vadd.f32 %v3402_v20, %v5456_v29 }
 0x321   : > { %3134 = vmatprep.subr.bf16.mxu0 %v4013_v11  ;;  %3177 = vmatprep.subr.bf16.mxu1 %v4015_v12 }
 0x322   : > { %3404 = vadd.xlane.f32.xlu0 %v3403_v25 }
 0x324   : > { %3135 = vmatpush1.bf16.msra.mxu0 %v4012_v27  ;;  %3178 = vmatpush1.bf16.msra.mxu1 %v4014_v28 }
 0x327   : > { %3153 = vmatmul.mubr.bf16.vlgmr.msra.gmra.mrb[28].mxu0 %v5538_v39  ;;  %3196 = vmatmul.mubr.bf16.vlgmr.msra.gmra.mrb[28].mxu1 %v5538_v39  ;;  %v3391_v39 = vadd.f32 %v3390_v40, %v5499_v55 }
 0x329   : > { %v3392_v30 = vadd.f32 %v3391_v39, %v5420_v9 }
 0x32b   : > { %v3393_v21 = vadd.f32 %v3392_v30, %v5502_v62  ;;  %v4533_v30 = vld [vmem:[%s5361_s26 + $0x30] sm:$0xff] }
 0x32d   : > { %v3394_v26 = vadd.f32 %v3393_v21, %v5440_v19 }
 0x32f   : > { %3395 = vadd.xlane.f32.xlu1 %v3394_v26 }
 0x39a   : > { %v2512_v42 = vpop.f32.mrb[16].mxu0  ;;  %v2555_v43 = vpop.f32.mrb[16].mxu1 }
 0x39b   : > { %v3286_v45 = vsub.f32 %v2512_v42, %v4523_v44  ;;  %v2514_v46 = vpop.f32.mrb[17].mxu0  ;;  %v2557_v48 = vpop.f32.mrb[17].mxu1  ;;  %v3288_v52 = vsub.f32 %v2555_v43, %v4524_v51  ;;  %v4532_v44 = vld [vmem:[%s5361_s26 + $0x28] sm:$0xff] }
 0x39c   : > { %v3287_v32 = vsub.f32 %v2514_v46, %v4525_v53  ;;  %v2516_v10 = vpop.f32.mrb[18].mxu0  ;;  %v2559_v1 = vpop.f32.mrb[18].mxu1  ;;  %v3289_v57 = vsub.f32 %v2557_v48, %v4527_v56  ;;  %v4537_v56 = vld [vmem:[%s5361_s26 + $0x70] sm:$0xff] }
 0x39d   : > { %v3302_v61 = vmul.f32 %v3286_v45, %v3286_v45  ;;  %v3294_v6 = vsub.f32 %v2516_v10, %v4526_v2  ;;  %v2518_v59 = vpop.f32.mrb[19].mxu0  ;;  %v2561_v3 = vpop.f32.mrb[19].mxu1  ;;  %v3296_v60 = vsub.f32 %v2559_v1, %v4528_v58  ;;  %v3304_v22 = vmul.f32 %v3288_v52, %v3288_v52  ;;  %v4534_v52 = vld [vmem:[%s5361_s26 + $0x60] sm:$0xff] }
 0x39e   : > { %v3303_v54 = vmul.f32 %v3287_v32, %v3287_v32  ;;  %v3295_v16 = vsub.f32 %v2518_v59, %v4529_v13  ;;  %v3297_v35 = vsub.f32 %v2561_v3, %v4530_v24  ;;  %v3305_v11 = vmul.f32 %v3289_v57, %v3289_v57  ;;  %v4536_v59 = vld [vmem:[%s5361_s26 + $0x38] sm:$0xff] }
 0x39f   : > { %v3310_v18 = vmul.f32 %v3294_v6, %v3294_v6  ;;  %v3312_v27 = vmul.f32 %v3296_v60, %v3296_v60 }
 0x3a0   : > { %v3318_v23 = vadd.f32 %v3303_v54, %v3302_v61  ;;  %v3311_v36 = vmul.f32 %v3295_v16, %v3295_v16  ;;  %v3313_v33 = vmul.f32 %v3297_v35, %v3297_v35  ;;  %v4535_v61 = vld [vmem:[%s5361_s26 + $0x68] sm:$0xff] }
 0x3a2   : > { %v3319_v12 = vadd.f32 %v3318_v23, %v3304_v22  ;;  %v3327_v28 = vadd.f32 %v3311_v36, %v3310_v18  ;;  %v4538_v18 = vld [vmem:[%s5361_s26 + $0x78] sm:$0xff] }
 0x3a4   : > { %v3320_v31 = vadd.f32 %v3319_v12, %v3305_v11  ;;  %v3328_v34 = vadd.f32 %v3327_v28, %v3312_v27 }
 0x3a6   : > { %v3329_v37 = vadd.f32 %v3328_v34, %v3313_v33 }
 0x3ba   : > { %v2598_v38 = vpop.f32.mrb[20].mxu0  ;;  %v2641_v40 = vpop.f32.mrb[20].mxu1 }
 0x3bb   : > { %v3290_v39 = vsub.f32 %v2598_v38, %v4531_v41  ;;  %v2600_v42 = vpop.f32.mrb[21].mxu0  ;;  %v2643_v43 = vpop.f32.mrb[21].mxu1  ;;  %v3292_v51 = vsub.f32 %v2641_v40, %v4533_v30 }
 0x3bc   : > { %v3291_v45 = vsub.f32 %v2600_v42, %v4532_v44  ;;  %v2602_v46 = vpop.f32.mrb[22].mxu0  ;;  %v2645_v48 = vpop.f32.mrb[22].mxu1  ;;  %v3293_v3 = vsub.f32 %v2643_v43, %v4536_v59 }
 0x3bd   : > { %v3306_v49 = vmul.f32 %v3290_v39, %v3290_v39  ;;  %v3298_v53 = vsub.f32 %v2602_v46, %v4534_v52  ;;  %v2604_v32 = vpop.f32.mrb[23].mxu0  ;;  %v2647_v10 = vpop.f32.mrb[23].mxu1  ;;  %v3300_v57 = vsub.f32 %v2645_v48, %v4537_v56  ;;  %v3308_v60 = vmul.f32 %v3292_v51, %v3292_v51 }
 0x3be   : > { %v3307_v1 = vmul.f32 %v3291_v45, %v3291_v45  ;;  %v3299_v2 = vsub.f32 %v2604_v32, %v4535_v61  ;;  %v3301_v20 = vsub.f32 %v2647_v10, %v4538_v18  ;;  %v3309_v21 = vmul.f32 %v3293_v3, %v3293_v3 }
 0x3bf   : > { %v3321_v6 = vadd.f32 %v3320_v31, %v3306_v49  ;;  %v3314_v54 = vmul.f32 %v3298_v53, %v3298_v53  ;;  %v3316_v22 = vmul.f32 %v3300_v57, %v3300_v57 }
 0x3c0   : > { %v3315_v58 = vmul.f32 %v3299_v2, %v3299_v2  ;;  %v3317_v24 = vmul.f32 %v3301_v20, %v3301_v20 }
 0x3c1   : > { %v3322_v13 = vadd.f32 %v3321_v6, %v3307_v1  ;;  %v3330_v16 = vadd.f32 %v3329_v37, %v3314_v54 }
 0x3c3   : > { %v3331_v23 = vadd.f32 %v3330_v16, %v3315_v58  ;;  %v3323_v36 = vadd.f32 %v3322_v13, %v3308_v60 }
 0x3c5   : > { %v5592_v35 = vadd.f32 %v3323_v36, %v3309_v21  ;;  %v3332_v25 = vadd.f32 %v3331_v23, %v3316_v22 }
 0x3c7   : > { %v5594_v26 = vadd.f32 %v3332_v25, %v3317_v24 }
 0x3da   : > { %v3068_v11 = vpop.f32.mrb[24].mxu0  ;;  %v3111_v12 = vpop.f32.mrb[24].mxu1 }
 0x3db   : > { %v3206_v27 = vsub.f32 0.0, %v3068_v11  ;;  %v3208_v28 = vsub.f32 0.0, %v3111_v12  ;;  %v3070_v31 = vpop.f32.mrb[25].mxu0  ;;  %v3113_v33 = vpop.f32.mrb[25].mxu1 }
 0x3dc   : > { %v3207_v34 = vsub.f32 0.0, %v3070_v31  ;;  %v3209_v37 = vsub.f32 0.0, %v3113_v33  ;;  %v3072_v38 = vpop.f32.mrb[26].mxu0  ;;  %v3115_v40 = vpop.f32.mrb[26].mxu1 }
 0x3dd   : > { %v3222_v41 = vmul.f32 1.442695, %v3206_v27  ;;  %v3226_v39 = vmul.f32 1.442695, %v3208_v28  ;;  %v3214_v42 = vsub.f32 0.0, %v3072_v38  ;;  %v3216_v43 = vsub.f32 0.0, %v3115_v40 }
 0x3de   : > { %v3224_v44 = vmul.f32 1.442695, %v3207_v34  ;;  %v3228_v45 = vmul.f32 1.442695, %v3209_v37  ;;  %v3074_v46 = vpop.f32.mrb[27].mxu0  ;;  %v3117_v48 = vpop.f32.mrb[27].mxu1 }
 0x3df   : > { %4459 = vpow2.f32 %v3222_v41  ;;  %v3238_v49 = vmul.f32 1.442695, %v3214_v42  ;;  %v3215_v30 = vsub.f32 0.0, %v3074_v46  ;;  %v3242_v51 = vmul.f32 1.442695, %v3216_v43 }
 0x3e0   : > { %4461 = vpow2.f32 %v3226_v39  ;;  %v3217_v52 = vsub.f32 0.0, %v3117_v48 }
 0x3e1   : > { %4463 = vpow2.f32 %v3224_v44  ;;  %v3240_v53 = vmul.f32 1.442695, %v3215_v30 }
 0x3e2   : > { %4465 = vpow2.f32 %v3228_v45  ;;  %v3244_v32 = vmul.f32 1.442695, %v3217_v52 }
 0x3e3   : > { %4467 = vpow2.f32 %v3238_v49 }
 0x3e4   : > { %4469 = vpow2.f32 %v3242_v51 }
 0x3e5   : > { %4471 = vpow2.f32 %v3240_v53 }
 0x3e6   : > { %4473 = vpow2.f32 %v3244_v32 }
 0x3e9   : > { %v4460_v10 = vpop.eup %4459 }
 0x3ea   : > { %v4462_v1 = vpop.eup %4461  ;;  %v3254_v61 = vadd.f32 1.0, %v4460_v10 }
 0x3eb   : > { %v4464_v2 = vpop.eup %4463  ;;  %v3256_v6 = vadd.f32 1.0, %v4462_v1 }
 0x3ec   : > { %v4466_v59 = vpop.eup %4465  ;;  %4475 = vrcp.f32 %v3254_v61  ;;  %v3255_v3 = vadd.f32 1.0, %v4464_v2 }
 0x3ed   : > { %v4468_v54 = vpop.eup %4467  ;;  %4477 = vrcp.f32 %v3256_v6  ;;  %v3257_v56 = vadd.f32 1.0, %v4466_v59 }
 0x3ee   : > { %v4470_v57 = vpop.eup %4469  ;;  %4479 = vrcp.f32 %v3255_v3  ;;  %v3262_v58 = vadd.f32 1.0, %v4468_v54 }
 0x3ef   : > { %v4472_v60 = vpop.eup %4471  ;;  %4481 = vrcp.f32 %v3257_v56  ;;  %v3264_v18 = vadd.f32 1.0, %v4470_v57 }
 0x3f0   : > { %v4474_v13 = vpop.eup %4473  ;;  %4483 = vrcp.f32 %v3262_v58  ;;  %v3263_v16 = vadd.f32 1.0, %v4472_v60 }
 0x3f1   : > { %v3265_v20 = vadd.f32 1.0, %v4474_v13 }
 0x3f2   : > { %4485 = vrcp.f32 %v3263_v16 }
 0x3f3   : > { %4487 = vrcp.f32 %v3264_v18 }
 0x3f4   : > { %4489 = vrcp.f32 %v3265_v20 }
 0x3f6   : > { %v4476_v21 = vpop.eup %4475 }
 0x3f7   : > { %v4478_v22 = vpop.eup %4477  ;;  %v3336_v23 = vmul.f32 %v4476_v21, %v5410_v4 }
 0x3f8   : > { %v4480_v36 = vpop.eup %4479  ;;  %v3338_v31 = vmul.f32 %v4478_v22, %v5412_v5 }
 0x3f9   : > { %v4482_v24 = vpop.eup %4481  ;;  %v3370_v25 = vadd.f32 %v4480_v36, %v4476_v21  ;;  %v3337_v11 = vmul.f32 %v4480_v36, %v5402_v63 }
 0x3fa   : > { %v4484_v12 = vpop.eup %4483  ;;  %v3154_v27 = vpop.f32.mrb[28].mxu0  ;;  %v3339_v44 = vmul.f32 %v4482_v24, %v5404_v0 }
 0x3fb   : > { %v3197_v28 = vpop.f32.mrb[28].mxu1  ;;  %v3210_v33 = vsub.f32 0.0, %v3154_v27  ;;  %v3156_v37 = vpop.f32.mrb[29].mxu0  ;;  %v3371_v40 = vadd.f32 %v4478_v22, %v3370_v25  ;;  %v3352_v41 = vadd.f32 %v3337_v11, %v3336_v23  ;;  %v3344_v45 = vmul.f32 %v4484_v12, %v5415_v7 }
 0x3fc   : > { %v3212_v34 = vsub.f32 0.0, %v3197_v28  ;;  %v3199_v38 = vpop.f32.mrb[29].mxu1  ;;  %v3211_v39 = vsub.f32 0.0, %v3156_v37  ;;  %v3158_v43 = vpop.f32.mrb[30].mxu0 }
 0x3fd   : > { %v3213_v42 = vsub.f32 0.0, %v3199_v38  ;;  %v3201_v4 = vpop.f32.mrb[30].mxu1  ;;  %v4486_v63 = vpop.eup %4485  ;;  %v3230_v46 = vmul.f32 1.442695, %v3210_v33  ;;  %v3218_v49 = vsub.f32 0.0, %v3158_v43  ;;  %v3372_v32 = vadd.f32 %v4482_v24, %v3371_v40 }
 0x3fe   : > { %v3234_v48 = vmul.f32 1.442695, %v3212_v34  ;;  %v3220_v30 = vsub.f32 0.0, %v3201_v4  ;;  %v3232_v5 = vmul.f32 1.442695, %v3211_v39  ;;  %v3160_v52 = vpop.f32.mrb[31].mxu0  ;;  %v3353_v10 = vadd.f32 %v3352_v41, %v3338_v31  ;;  %v4488_v1 = vpop.eup %4487 }
 0x3ff   : > { %v3236_v51 = vmul.f32 1.442695, %v3213_v42  ;;  %v3203_v53 = vpop.f32.mrb[31].mxu1  ;;  %4491 = vpow2.f32 %v3230_v46  ;;  %v3246_v61 = vmul.f32 1.442695, %v3218_v49  ;;  %v3219_v6 = vsub.f32 0.0, %v3160_v52  ;;  %v4490_v3 = vpop.eup %4489 }
 0x400   : > { %v3250_v2 = vmul.f32 1.442695, %v3220_v30  ;;  %4493 = vpow2.f32 %v3234_v48  ;;  %v3221_v0 = vsub.f32 0.0, %v3203_v53  ;;  %v3354_v59 = vadd.f32 %v3353_v10, %v3339_v44 }
 0x401   : > { %v3345_v7 = vmul.f32 %v4486_v63, %v5417_v8  ;;  %4495 = vpow2.f32 %v3232_v5  ;;  %v3248_v54 = vmul.f32 1.442695, %v3219_v6  ;;  %v3379_v56 = vadd.f32 %v4486_v63, %v4484_v12 }
 0x402   : > { %4497 = vpow2.f32 %v3236_v51  ;;  %v3252_v57 = vmul.f32 1.442695, %v3221_v0  ;;  %v3346_v58 = vmul.f32 %v4488_v1, %v5430_v14  ;;  %v3347_v16 = vmul.f32 %v4490_v3, %v5432_v15 }
 0x403   : > { %v3361_v60 = vadd.f32 %v3345_v7, %v3344_v45  ;;  %4499 = vpow2.f32 %v3246_v61  ;;  %v3380_v13 = vadd.f32 %v4488_v1, %v3379_v56 }
 0x404   : > { %4501 = vpow2.f32 %v3250_v2 }
 0x405   : > { %v3362_v18 = vadd.f32 %v3361_v60, %v3346_v58  ;;  %4503 = vpow2.f32 %v3248_v54  ;;  %v3381_v20 = vadd.f32 %v4490_v3, %v3380_v13  ;;  %v3396_v3 = vpop.xlane.xlu1 %3395 }
 0x406   : > { %4505 = vpow2.f32 %v3252_v57 }
 0x407   : > { %v3363_v21 = vadd.f32 %v3362_v18, %v3347_v16  ;;  %v4540_v18 = vld [vmem:[%s5363_s30 + $0x8] sm:$0xff] }
 0x409   : > { %v4492_v8 = vpop.eup %4491 }
 0x40a   : > { %v4494_v22 = vpop.eup %4493  ;;  %v3258_v23 = vadd.f32 1.0, %v4492_v8 }
 0x40b   : > { %v4496_v36 = vpop.eup %4495  ;;  %v3260_v24 = vadd.f32 1.0, %v4494_v22 }
 0x40c   : > { %v4498_v25 = vpop.eup %4497  ;;  %4507 = vrcp.f32 %v3258_v23  ;;  %v3259_v11 = vadd.f32 1.0, %v4496_v36 }
 0x40d   : > { %v4500_v14 = vpop.eup %4499  ;;  %4509 = vrcp.f32 %v3260_v24  ;;  %v3261_v12 = vadd.f32 1.0, %v4498_v25 }
 0x40e   : > { %v4502_v27 = vpop.eup %4501  ;;  %4511 = vrcp.f32 %v3259_v11  ;;  %v3266_v28 = vadd.f32 1.0, %v4500_v14 }
 0x40f   : > { %v4504_v15 = vpop.eup %4503  ;;  %4513 = vrcp.f32 %v3261_v12  ;;  %v3268_v31 = vadd.f32 1.0, %v4502_v27 }
 0x410   : > { %v4506_v33 = vpop.eup %4505  ;;  %4515 = vrcp.f32 %v3266_v28  ;;  %v3267_v34 = vadd.f32 1.0, %v4504_v15 }
 0x411   : > { %4517 = vrcp.f32 %v3268_v31  ;;  %v3269_v37 = vadd.f32 1.0, %v4506_v33 }
 0x412   : > { %4519 = vrcp.f32 %v3267_v34 }
 0x413   : > { %4521 = vrcp.f32 %v3269_v37 }
 0x416   : > { %v4508_v38 = vpop.eup %4507 }
 0x417   : > { %v4510_v40 = vpop.eup %4509  ;;  %v3373_v41 = vadd.f32 %v4508_v38, %v3372_v32  ;;  %v3340_v39 = vmul.f32 %v4508_v38, %v5499_v55 }
 0x418   : > { %v4512_v42 = vpop.eup %4511  ;;  %v3342_v46 = vmul.f32 %v4510_v40, %v5502_v62 }
 0x419   : > { %v4514_v43 = vpop.eup %4513  ;;  %v3374_v4 = vadd.f32 %v4512_v42, %v3373_v41  ;;  %v3341_v44 = vmul.f32 %v4512_v42, %v5420_v9  ;;  %v3355_v45 = vadd.f32 %v3354_v59, %v3340_v39 }
 0x41a   : > { %v4516_v63 = vpop.eup %4515  ;;  %v3343_v53 = vmul.f32 %v4514_v43, %v5440_v19 }
 0x41b   : > { %v4518_v48 = vpop.eup %4517  ;;  %v3375_v49 = vadd.f32 %v4510_v40, %v3374_v4  ;;  %v3356_v30 = vadd.f32 %v3355_v45, %v3341_v44  ;;  %v3348_v5 = vmul.f32 %v4516_v63, %v5491_v47  ;;  %v3382_v51 = vadd.f32 %v4516_v63, %v3381_v20 }
 0x41c   : > { %v4520_v52 = vpop.eup %4519  ;;  %v3350_v62 = vmul.f32 %v4518_v48, %v5494_v50 }
 0x41d   : > { %v3376_v32 = vadd.f32 %v4514_v43, %v3375_v49  ;;  %v3357_v55 = vadd.f32 %v3356_v30, %v3342_v46  ;;  %v3349_v10 = vmul.f32 %v4520_v52, %v5436_v17  ;;  %v3364_v1 = vadd.f32 %v3363_v21, %v3348_v5  ;;  %v4522_v61 = vpop.eup %4521  ;;  %v3405_v17 = vpop.xlane.xlu0 %3404 }
 0x41e   : > { %v3383_v9 = vadd.f32 %v4520_v52, %v3382_v51  ;;  %v3351_v59 = vmul.f32 %v4522_v61, %v5456_v29  ;;  %v4539_v29 = vld [vmem:[%s5363_s30] sm:$0xff] }
 0x41f   : > { %3377 = vadd.xlane.f32.xlu0 %v3376_v32  ;;  %v3358_v2 = vadd.f32 %v3357_v55, %v3343_v53  ;;  %v3365_v6 = vadd.f32 %v3364_v1, %v3349_v10 }
 0x420   : > { %v3384_v0 = vadd.f32 %v4518_v48, %v3383_v9 }
 0x421   : > { %v3366_v47 = vadd.f32 %v3365_v6, %v3350_v62 }
 0x422   : > { %v3385_v7 = vadd.f32 %v4522_v61, %v3384_v0 }
 0x423   : > { %3359 = vadd.xlane.f32.xlu0 %v3358_v2  ;;  %v3367_v19 = vadd.f32 %v3366_v47, %v3351_v59 }
 0x425   : > { %3368 = vadd.xlane.f32.xlu1 %v3367_v19 }
 0x427   : > { %3386 = vadd.xlane.f32.xlu0 %v3385_v7 }
 0x429   : > { %3325 = vadd.xlane.f32.xlu1 %v5592_v35 }
 0x42b   : > { %3334 = vadd.xlane.f32.xlu0 %v5594_v26 }
 0x4ac   : > { %v3378_v54 = vpop.xlane.xlu0 %3377 }
 0x4b0   : > { %v3360_v50 = vpop.xlane.xlu0 %3359 }
 0x4b1   : > { %v3451_v16 = vsub.f32 %v3378_v54, %v3360_v50  ;;  %v3429_v21 = vmul.f32 %v4539_v29, %v3360_v50  ;;  %v3475_v35 = vsub.f32 %v3396_v3, %v3360_v50 }
 0x4b2   : > { %v3369_v56 = vpop.xlane.xlu1 %3368 }
 0x4b3   : > { %v3453_v26 = vmul.f32 %v4539_v29, %v3451_v16  ;;  %v3430_v8 = vmul.f32 %v4540_v18, %v3369_v56  ;;  %v3477_v23 = vmul.f32 %v4539_v29, %v3475_v35  ;;  %v3476_v36 = vsub.f32 %v3405_v17, %v3369_v56 }
 0x4b4   : > { %v3387_v57 = vpop.xlane.xlu0 %3386 }
 0x4b5   : > { %v3452_v22 = vsub.f32 %v3387_v57, %v3369_v56  ;;  %v3478_v25 = vmul.f32 %v4540_v18, %v3476_v36 }
 0x4b6   : > { %v3326_v58 = vpop.xlane.xlu1 %3325 }
 0x4b7   : > { %v3406_v60 = vmul.f32 %v4539_v29, %v3326_v58  ;;  %v3454_v24 = vmul.f32 %v4540_v18, %v3452_v22  ;;  %v3499_v58 = vlaneseq }
 0x4b8   : > { %v3335_v13 = vpop.xlane.xlu0 %3334 }
 0x4b9   : > { %3410 = vrot.lane.b32.xlu1 %v3406_v60, %s4905_s3  ;;  %v3407_v20 = vmul.f32 %v4540_v18, %v3335_v13  ;;  %v3500_v29 = vand.u32 127, %v3499_v58 }
 0x4bb   : > { %3412 = vrot.lane.b32.xlu0 %v3407_v20, %s4905_s3  ;;  %vm3504_vm1 = vcmp.eq.s32.totalorder %v3500_v29, 3  ;;  %vm3503_vm2 = vcmp.eq.s32.totalorder %v3500_v29, 2  ;;  %vm3502_vm3 = vcmp.eq.s32.totalorder %v3500_v29, 1  ;;  %vm3501_vm4 = vcmp.eq.s32.totalorder %v3500_v29, 0 }
 0x4bd   : > { %3433 = vrot.lane.b32.xlu1 %v3429_v21, %s4905_s3 }
 0x4bf   : > { %3457 = vrot.lane.b32.xlu0 %v3453_v26, %s4905_s3 }
 0x4c1   : > { %3435 = vrot.lane.b32.xlu1 %v3430_v8, %s4905_s3 }
 0x4c3   : > { %3481 = vrot.lane.b32.xlu0 %v3477_v23, %s4905_s3 }
 0x4c5   : > { %3459 = vrot.lane.b32.xlu1 %v3454_v24, %s4905_s3 }
 0x4c9   : > { %3483 = vrot.lane.b32.xlu1 %v3478_v25, %s4905_s3 }
 0x52b   : > { %v3411_v11 = vpop.permute.xlu1 %3410 }
 0x52c   : > { %v3417_v12 = vsel %vm3416_vm0, %v3411_v11, 0.0 }
 0x52d   : > { %v3413_v14 = vpop.permute.xlu0 %3412 }
 0x52e   : > { %v3418_v27 = vsel %vm3416_vm0, %v3413_v14, 0.0 }
 0x52f   : > { %v3434_v28 = vpop.permute.xlu1 %3433  ;;  %v3419_v15 = vadd.f32 %v3418_v27, %v3417_v12 }
 0x530   : > { %v3439_v34 = vsel %vm3416_vm0, %v3434_v28, 0.0 }
 0x531   : > { %3420 = vadd.xlane.f32.xlu0 %v3419_v15  ;;  %v3458_v33 = vpop.permute.xlu0 %3457 }
 0x532   : > { %v3463_v41 = vsel %vm3416_vm0, %v3458_v33, 0.0 }
 0x533   : > { %v3436_v31 = vpop.permute.xlu1 %3435 }
 0x534   : > { %v3440_v37 = vsel %vm3416_vm0, %v3436_v31, 0.0 }
 0x535   : > { %v3441_v38 = vadd.f32 %v3440_v37, %v3439_v34  ;;  %v3482_v42 = vpop.permute.xlu0 %3481 }
 0x536   : > { %v3487_v44 = vsel %vm3416_vm0, %v3482_v42, 0.0 }
 0x537   : > { %3442 = vadd.xlane.f32.xlu1 %v3441_v38  ;;  %v3460_v40 = vpop.permute.xlu1 %3459 }
 0x538   : > { %v3464_v39 = vsel %vm3416_vm0, %v3460_v40, 0.0 }
 0x539   : > { %v3465_v43 = vadd.f32 %v3464_v39, %v3463_v41 }
 0x53b   : > { %v3484_v4 = vpop.permute.xlu1 %3483  ;;  %3466 = vadd.xlane.f32.xlu0 %v3465_v43 }
 0x53c   : > { %v3488_v45 = vsel %vm3416_vm0, %v3484_v4, 0.0 }
 0x53d   : > { %v3489_v63 = vadd.f32 %v3488_v45, %v3487_v44 }
 0x53f   : > { %3490 = vadd.xlane.f32.xlu0 %v3489_v63 }
 0x5be   : > { %v3421_v46 = vpop.xlane.xlu0 %3420 }
 0x5bf   : > { %v3422_v48 = vrot.slane %v3421_v46, 4 }
 0x5c1   : > { %v3423_v49 = vadd.f32 %v3422_v48, %v3421_v46 }
 0x5c3   : > { %v3424_v30 = vrot.slane %v3423_v49, 2 }
 0x5c4   : > { %v3443_v5 = vpop.xlane.xlu1 %3442 }
 0x5c5   : > { %v3444_v51 = vrot.slane %v3443_v5, 4  ;;  %v3425_v52 = vadd.f32 %v3424_v30, %v3423_v49 }
 0x5c7   : > { %v3445_v53 = vadd.f32 %v3444_v51, %v3443_v5  ;;  %v3426_v32 = vrot.slane %v3425_v52, 1 }
 0x5c8   : > { %v3467_v55 = vpop.xlane.xlu0 %3466 }
 0x5c9   : > { %v3446_v10 = vrot.slane %v3445_v53, 2  ;;  %v3468_v1 = vrot.slane %v3467_v55, 4  ;;  %v3427_v61 = vadd.f32 %v3426_v32, %v3425_v52 }
 0x5cb   : > { %v3447_v9 = vadd.f32 %v3446_v10, %v3445_v53  ;;  %v3469_v2 = vadd.f32 %v3468_v1, %v3467_v55  ;;  %4203 = vpush %v3427_v61 }
 0x5cc   : > { %v3491_v62 = vpop.xlane.xlu0 %3490 }
 0x5cd   : > { %v3470_v6 = vrot.slane %v3469_v2, 2  ;;  %v3492_v0 = vrot.slane %v3491_v62, 4  ;;  %v3448_v59 = vrot.slane %v3447_v9, 1 }
 0x5cf   : > { %v3493_v47 = vadd.f32 %v3492_v0, %v3491_v62  ;;  %v3449_v7 = vadd.f32 %v3448_v59, %v3447_v9  ;;  %v3471_v19 = vadd.f32 %v3470_v6, %v3469_v2 }
 0x5d1   : > { %v3494_v17 = vrot.slane %v3493_v47, 2  ;;  %4205 = vpush %v3449_v7  ;;  %v3472_v3 = vrot.slane %v3471_v19, 1 }
 0x5d3   : > { %v3495_v54 = vadd.f32 %v3494_v17, %v3493_v47  ;;  %v3473_v50 = vadd.f32 %v3472_v3, %v3471_v19 }
 0x5d5   : > { %4207 = vpush %v3473_v50  ;;  %v3496_v56 = vrot.slane %v3495_v54, 1 }
 0x5d7   : > { %v3497_v57 = vadd.f32 %v3496_v56, %v3495_v54 }
 0x5d9   : > { %4209 = vpush %v3497_v57 }
 0x5fc   : > { %s4204_s7 = spop %4203 }
 0x5fd   : > { %v3511_v21 = vstv %s4204_s7 }
 0x602   : > { %s4206_s14 = spop %4205 }
 0x603   : > { %v3509_v18 = vstv %s4206_s14 }
 0x606   : > { %s4208_s15 = spop %4207 }
 0x607   : > { %v3507_v13 = vstv %s4208_s15 }
 0x60a   : > { %s4210_s10 = spop %4209 }
 0x60b   : > { %v3505_v60 = vstv %s4210_s10 }
 0x60c   : > { %v3506_v16 = vsel %vm3504_vm1, %v3505_v60, 0.0 }
 0x60d   : > { %v3508_v20 = vsel %vm3503_vm2, %v3507_v13, %v3506_v16 }
 0x60e   : > { %v3510_v35 = vsel %vm3502_vm3, %v3509_v18, %v3508_v20 }
 0x60f   : > { %v3512_v26 = vsel %vm3501_vm4, %v3511_v21, %v3510_v35 }
 0x610   : > { %3513 = vst [vmem:[%s564_s22] sm:$0x1] %v3512_v26 }
 0x611   : > { %4816 = shalt.err (!%p4813_p9)
}
 0x612   : > { %s4817_s11 = scalar_lea.hbm %s5629_s28, 16  ;;  %s4821_s26 = scalar_lea.hbm %s5778_s29, 32 }
 0x613   : > { %p4818_p10 = scmp.ne.s32.totalorder %s5629_s28, %s4817_s11  ;;  %p4822_p2 = scmp.lt.u32.totalorder %s5629_s28, %s5778_s29 }
 0x614   : > { %p4823_p11 = scmp.lt.u32.totalorder %s4821_s26, %s4817_s11  ;;  %p4825_p12 = scmp.lt.u32.totalorder %s4817_s11, %s5629_s28 }
 0x615   : > { %p4819_p8 = pnand %p4818_p10, %p5779_p1 }
 0x616   : > { %p4824_p0 = por %p4823_p11, %p4822_p2 }
 0x617   : > { %p4820_p7 = pneg %p4819_p8 }
 0x618   : > { %p4826_p3 = por %p4825_p12, %p4824_p0 }
 0x61a   : > { %p4827_p5 = pnand %p4826_p3, %p4820_p7 }
 0x61c   : > { %4830 = shalt.err (!%p4827_p5)
}
 0x61d   : > { %4237 = dma.vmem_to_hbm [thread:$0]  (%p5779_p1), %s5631_s21, 16, %s5629_s28, %s3515_s17  }
 0x61e PF: > { %s5780_s27 = sld [smem:[#allocation24_spill]]  ;;  %s5781_s3 = sld [smem:[#allocation29_spill]] }
 0x61f   : > { %p5783_p4 = scmp.ge.s32.totalorder %s4885_s12, 2 }
 0x624   : > { %s3539_s7 = sand.u32 1, %s5780_s27   ;;  %p5782_p6 = scmp.ne.s32.totalorder %s5781_s3, 0 }
 0x625   : > { %s3540_s14 = scalar_lea.sflag [#allocation4], %s3539_s7 }
 0x626   : > { %p4269_p13 = pnand %p5783_p4, %p5782_p6 }
 0x628   : > { %4868 = dma.done.wait (!%p4269_p13), %s3540_s14, 16  }
 0x629   : > { %4870 = vsyncadd (!%p4269_p13), %s3540_s14, 4294967280  ;;  %s5784_s12 = sld [smem:[#allocation31_spill]]  ;;  %s5785_s30 = sld [smem:[#allocation25_spill]] }
 0x62a   : > { %s5786_s10 = sld [smem:[#allocation26_spill]]  ;;  %s5787_s11 = sld [smem:[#allocation32_spill]] }
 0x62f   : > { %p30_p9 = scmp.ge.s32.totalorder %s5784_s12, 4  }
 0x631   :  { %32 = sbr.rel (!%p30_p9) target bundleno = 17 (0x11), region = 165 }
 0x638   :  { %3544 = vsyncpa [#allocation3], 1 }
 0x639   :  { %3546 = vsyncpa [#allocation3 + $0x1], 1 }
 0x63a   :  { %3547 = vsyncpa [#allocation6], 1 }
 0x63b   :  { %3549 = vsyncpa [#allocation6 + $0x1], 1 }
 0x63c   :  { %3550 = vsyncpa [#allocation9], 1 }
 0x63d   :  { %3552 = vsyncpa [#allocation9 + $0x1], 1 }
 0x63e   :  { %3553 = vsyncpa [#allocation12], 1 }
 0x63f   :  { %3554 = vsyncpa [#allocation15], 1 }
 0x640   :  { %3555 = vsyncpa [#allocation4], 1 }
 0x641   :  { %3557 = vsyncpa [#allocation4 + $0x1], 1 }

</bundles_post_ra>
